<compile_context>
chip_gen: v7x
topology: tpu7x:2x2x1
jax: 0.10.0
libtpu: 0.0.40
codegen_flags: <defaults>
</compile_context>

<pallas_src>
import functools

import jax
import jax.numpy as jnp
from jax.experimental import pallas as pl
from jax.experimental.pallas import tpu as pltpu


# ----------------------------------------------------------------------------- helpers

def _round_up(x, m):
    return ((x + m - 1) // m) * m


def build_mean_adjacency(edge_index, num_nodes, dtype=jnp.float32):
    """Dense row-normalized adjacency for PyG mean aggregation.

    out[t] = mean_{edges (s -> t)} x[s]  =>  A[t, s] = count / in_degree(t).
    Nodes with no incoming edges get all-zero rows (PyG scatter-mean yields 0).
    """
    src, tgt = edge_index[0], edge_index[1]
    a = jnp.zeros((num_nodes, num_nodes), jnp.float32).at[tgt, src].add(1.0)
    deg = a.sum(axis=1, keepdims=True)
    a = jnp.where(deg > 0, a / deg, 0.0)
    return a.astype(dtype)


def _pad_block_matrix(w, row_blocks, col_blocks, d, dp):
    """Pad a (row_blocks*d, col_blocks*d) block matrix to (row_blocks*dp, col_blocks*dp),
    zero-padding each (d, d) sub-block so gate boundaries land on dp (a 128 multiple)."""
    w = w.reshape(row_blocks, d, col_blocks, d)
    w = jnp.pad(w, ((0, 0), (0, dp - d), (0, 0), (0, dp - d)))
    return w.reshape(row_blocks * dp, col_blocks * dp)


def _pad_block_bias(b, col_blocks, d, dp):
    b = b.reshape(1, col_blocks, d)
    b = jnp.pad(b, ((0, 0), (0, 0), (0, dp - d)))
    return b.reshape(1, col_blocks * dp)


# ----------------------------------------------------------------------------- kernel

def srgnn_cell_kernel(a_in_ref, a_out_ref, lin_ref, hi_ref,
                      w_ih_ref, b_ih_ref, w_hh_ref, b_hh_ref,
                      out_ref, acc_ref, *, dp):
    k = pl.program_id(1)

    @pl.when(k == 0)
    def _init():
        acc_ref[...] = jnp.zeros_like(acc_ref)

    # Mean aggregation over incoming / reversed edges == row-stochastic matmuls against the
    # precomputed projection lin = [h@W_in+b_in | h@W_out+b_out]  (bf16 in, f32 accumulate).
    lin = lin_ref[...]                                               # (TK, 2*dp)
    acc_ref[:, :dp] += jnp.dot(a_in_ref[...], lin[:, :dp],
                               preferred_element_type=jnp.float32)
    acc_ref[:, dp:] += jnp.dot(a_out_ref[...], lin[:, dp:],
                               preferred_element_type=jnp.float32)

    @pl.when(k == pl.num_programs(1) - 1)
    def _finalize():
        inputs = acc_ref[...].astype(w_ih_ref.dtype)                 # (TM, 2*dp)
        gi = jnp.dot(inputs, w_ih_ref[...],
                     preferred_element_type=jnp.float32) + b_ih_ref[...]
        h = hi_ref[...]                                              # (TM, dp) bf16
        gh = jnp.dot(h, w_hh_ref[...],
                     preferred_element_type=jnp.float32) + b_hh_ref[...]

        i_r, i_i, i_n = gi[:, :dp], gi[:, dp:2 * dp], gi[:, 2 * dp:]
        h_r, h_i, h_n = gh[:, :dp], gh[:, dp:2 * dp], gh[:, 2 * dp:]

        reset_gate = jax.nn.sigmoid(i_r + h_r)
        input_gate = jax.nn.sigmoid(i_i + h_i)
        new_gate = jnp.tanh(i_n + reset_gate * h_n)
        hy = (1.0 - input_gate) * h.astype(jnp.float32) + input_gate * new_gate
        out_ref[...] = hy.astype(out_ref.dtype)


# ----------------------------------------------------------------------------- wrapper

def srgnn_cell(hidden, edge_index, params, *, compute_dtype=jnp.bfloat16):
    """JAX/Pallas equivalent of SRGNNCell.forward(hidden, edge_index)."""
    n, d = hidden.shape
    out_dtype = hidden.dtype

    # lane/sublane friendly padded sizes & tiles (divisible grids, 128-aligned lanes)
    dp = _round_up(d, 128)
    np_base = _round_up(max(n, 8), 128)
    if np_base <= 1024:
        # single tile per axis: one grid step, tight 128-granularity padding
        np_ = np_base
        tm = tk = np_
    else:
        # big graphs: large tiles to amortize per-step overhead, but only 512-granular padding
        tm = 512
        np_ = _round_up(n, tm)
        tk_cap = 1024 if dp >= 512 else 2048          # keep lin/acc VMEM in check for large D
        tk = max(t for t in (2048, 1024, 512) if (np_ % t == 0 and t <= tk_cap))

    # ---- glue (plain JAX, once): dense mean adjacencies + hoisted fused projection ----
    a_in = build_mean_adjacency(edge_index, np_, compute_dtype)
    a_out = build_mean_adjacency(edge_index[::-1], np_, compute_dtype)

    h_pad = jnp.zeros((np_, dp), compute_dtype).at[:n, :d].set(
        hidden.astype(compute_dtype))

    w_io = jnp.concatenate(
        [_pad_block_matrix(params["w_in"], 1, 1, d, dp),
         _pad_block_matrix(params["w_out"], 1, 1, d, dp)], axis=1).astype(compute_dtype)
    b_io = jnp.concatenate(
        [_pad_block_bias(params["b_in"], 1, d, dp),
         _pad_block_bias(params["b_out"], 1, d, dp)], axis=1).astype(jnp.float32)
    # Hoisted: computed ONCE here instead of once per row-tile inside the kernel.
    # Adding the bias before A is correct because A is row-stochastic (zero-degree rows are 0).
    lin = (jnp.dot(h_pad, w_io, preferred_element_type=jnp.float32)
           + b_io).astype(compute_dtype)                              # (np_, 2*dp)

    w_ih = _pad_block_matrix(params["w_ih"], 2, 3, d, dp).astype(compute_dtype)
    b_ih = _pad_block_bias(params["b_ih"], 3, d, dp).astype(jnp.float32)
    w_hh = _pad_block_matrix(params["w_hh"], 1, 3, d, dp).astype(compute_dtype)
    b_hh = _pad_block_bias(params["b_hh"], 3, d, dp).astype(jnp.float32)

    grid = (np_ // tm, np_ // tk)

    # NOTE: resident weight specs could use pipeline_mode=pl.Buffered(1) on v7x to skip double
    # buffering; kept at default depth for lowering compatibility (budget already fits).
    def resident(shape):
        return pl.BlockSpec(shape, lambda i, k: (0, 0))

    in_specs = [
        pl.BlockSpec((tm, tk), lambda i, k: (i, k)),       # a_in tile
        pl.BlockSpec((tm, tk), lambda i, k: (i, k)),       # a_out tile
        pl.BlockSpec((tk, 2 * dp), lambda i, k: (k, 0)),   # lin (contraction rows)
        pl.BlockSpec((tm, dp), lambda i, k: (i, 0)),       # hidden (output rows)
        resident((2 * dp, 3 * dp)),                        # w_ih
        resident((1, 3 * dp)),                             # b_ih
        resident((dp, 3 * dp)),                            # w_hh
        resident((1, 3 * dp)),                             # b_hh
    ]
    out_spec = pl.BlockSpec((tm, dp), lambda i, k: (i, 0))

    # ---- cost estimate & VMEM budget ----
    ebytes = jnp.dtype(compute_dtype).itemsize
    out_ebytes = jnp.dtype(out_dtype).itemsize
    w_bytes = int((w_ih.size + w_hh.size) * ebytes + (b_ih.size + b_hh.size) * 4)

    flops = int(
        2 * 2 * np_ * np_ * dp                             # A_in / A_out matmuls
        + 2 * np_ * (2 * dp) * (3 * dp)                    # gi
        + 2 * np_ * dp * (3 * dp))                         # gh
    bytes_accessed = int(
        2 * np_ * np_ * ebytes                             # adjacency streams (dominant)
        + (np_ // tm) * np_ * 2 * dp * ebytes              # lin re-streamed per row tile
        + np_ * dp * ebytes                                # hidden rows
        + np_ * dp * out_ebytes                            # output writeback
        + w_bytes)
    cost = pl.CostEstimate(flops=flops, transcendentals=int(3 * np_ * dp),
                           bytes_accessed=bytes_accessed)

    need = int(
        2 * (2 * tm * tk * ebytes                          # dbl-buffered A_in + A_out tiles
             + tk * 2 * dp * ebytes                        # dbl-buffered lin tile
             + tm * dp * ebytes                            # dbl-buffered hidden rows
             + tm * dp * out_ebytes)                       # dbl-buffered output tile
        + tm * 2 * dp * 4                                  # f32 accumulator
        + 2 * w_bytes)                                     # resident weights (double-buffered)
    try:
        vmem_cap = int(pltpu.get_tpu_info().vmem_capacity_bytes)
    except Exception:  # pragma: no cover - conservative fallback (v7x-sized)
        vmem_cap = 64 * 2 ** 20
    # Leave headroom below physical (important on v7x's 64 MiB); allow >64 MiB on v5e/v6e.
    vmem_limit = int(min(int(0.75 * vmem_cap), max(32 * 2 ** 20, int(1.5 * need))))
    vmem_limit = max(vmem_limit, need)

    out_pad = pl.pallas_call(
        functools.partial(srgnn_cell_kernel, dp=dp),
        out_shape=jax.ShapeDtypeStruct((np_, dp), out_dtype),
        grid_spec=pltpu.PrefetchScalarGridSpec(
            num_scalar_prefetch=0,
            grid=grid,
            in_specs=in_specs,
            out_specs=out_spec,
            scratch_shapes=[pltpu.VMEM((tm, 2 * dp), jnp.float32)],
        ),
        compiler_params=pltpu.CompilerParams(
            dimension_semantics=("parallel", "arbitrary"),
            vmem_limit_bytes=vmem_limit),
        cost_estimate=cost,
    )(a_in, a_out, lin, h_pad, w_ih, b_ih, w_hh, b_hh)

    return out_pad[:n, :d].astype(hidden.dtype)


# ----------------------------------------------------------------------------- params / reference

def init_params(key, dim):
    """Deterministic init mirroring SRGNNCell._reset_parameters (uniform ±1/sqrt(dim)).
    Weights are stored as (in_features, out_features)."""
    stdv = 1.0 / jnp.sqrt(jnp.float32(dim))
    ks = jax.random.split(key, 8)
    u = lambda k, shape: jax.random.uniform(k, shape, jnp.float32, -stdv, stdv)
    return {
        "w_in": u(ks[0], (dim, dim)),          "b_in": u(ks[1], (1, dim)),
        "w_out": u(ks[2], (dim, dim)),         "b_out": u(ks[3], (1, dim)),
        "w_ih": u(ks[4], (2 * dim, 3 * dim)),  "b_ih": u(ks[5], (1, 3 * dim)),
        "w_hh": u(ks[6], (dim, 3 * dim)),      "b_hh": u(ks[7], (1, 3 * dim)),
    }


def srgnn_cell_reference(hidden, edge_index, params, compute_dtype=jnp.bfloat16):
    """Pure-JAX reference mirroring the kernel's bf16-input / f32-accumulate path."""
    n, d = hidden.shape
    f32, cd = jnp.float32, compute_dtype
    a_in = build_mean_adjacency(edge_index, n, cd)
    a_out = build_mean_adjacency(edge_index[::-1], n, cd)
    h = hidden.astype(cd)
    lin_in = (jnp.dot(h, params["w_in"].astype(cd), preferred_element_type=f32)
              + params["b_in"]).astype(cd)
    lin_out = (jnp.dot(h, params["w_out"].astype(cd), preferred_element_type=f32)
               + params["b_out"]).astype(cd)
    input_in = jnp.dot(a_in, lin_in, preferred_element_type=f32)
    input_out = jnp.dot(a_out, lin_out, preferred_element_type=f32)
    inputs = jnp.concatenate([input_in, input_out], axis=-1).astype(cd)
    gi = jnp.dot(inputs, params["w_ih"].astype(cd), preferred_element_type=f32) + params["b_ih"]
    gh = jnp.dot(h, params["w_hh"].astype(cd), preferred_element_type=f32) + params["b_hh"]
    i_r, i_i, i_n = jnp.split(gi, 3, axis=-1)
    h_r, h_i, h_n = jnp.split(gh, 3, axis=-1)
    reset_gate = jax.nn.sigmoid(i_r + h_r)
    input_gate = jax.nn.sigmoid(i_i + h_i)
    new_gate = jnp.tanh(i_n + reset_gate * h_n)
    return (1.0 - input_gate) * h.astype(f32) + input_gate * new_gate


if __name__ == "__main__":
    key = jax.random.PRNGKey(0)
    k_h, k_e, k_p = jax.random.split(key, 3)

    num_nodes, dim, num_edges = 16, 32, 48
    hidden = jax.random.normal(k_h, (num_nodes, dim), jnp.float32)
    edge_index = jax.random.randint(k_e, (2, num_edges), 0, num_nodes, jnp.int32)
    params = init_params(k_p, dim)

    out = srgnn_cell(hidden, edge_index, params)
    jax.block_until_ready(out)

    ref = srgnn_cell_reference(hidden, edge_index, params).astype(out.dtype)
    assert out.shape == (num_nodes, dim)
    max_err = float(jnp.max(jnp.abs(out - ref)))
    assert jnp.allclose(out, ref, atol=1e-2, rtol=1e-2), f"Pallas mismatch, max err {max_err}"

    print("KERNEL_OK")
</pallas_src>

<mosaic_0001>
module attributes {stable_mosaic.version = 11 : i64} {
  func.func @srgnn_cell_kernel(%arg0: i32, %arg1: i32, %arg2: memref<128x128xbf16, #tpu.memory_space<vmem>>, %arg3: memref<128x128xbf16, #tpu.memory_space<vmem>>, %arg4: memref<128x256xbf16, #tpu.memory_space<vmem>>, %arg5: memref<128x128xbf16, #tpu.memory_space<vmem>>, %arg6: memref<256x384xbf16, #tpu.memory_space<vmem>>, %arg7: memref<1x384xf32, #tpu.memory_space<vmem>>, %arg8: memref<128x384xbf16, #tpu.memory_space<vmem>>, %arg9: memref<1x384xf32, #tpu.memory_space<vmem>>, %arg10: memref<128x128xf32, #tpu.memory_space<vmem>>, %arg11: memref<128x256xf32, #tpu.memory_space<vmem>>) attributes {dimension_semantics = [#tpu.dimension_semantics<parallel>, #tpu.dimension_semantics<arbitrary>], iteration_bounds = array<i64: 1, 1>, scalar_prefetch = 0 : i64, scratch_operands = 1 : i64, tpu.core_type = #tpu.core_type<tc>, window_params = [{transform_indices = @transform_0, window_bounds = array<i64: 128, 128>}, {transform_indices = @transform_1, window_bounds = array<i64: 128, 128>}, {transform_indices = @transform_2, window_bounds = array<i64: 128, 256>}, {transform_indices = @transform_3, window_bounds = array<i64: 128, 128>}, {pipeline_mode = #tpu.pipeline_mode<synchronous>, transform_indices = @transform_4, window_bounds = array<i64: 256, 384>}, {pipeline_mode = #tpu.pipeline_mode<synchronous>, transform_indices = @transform_5, window_bounds = array<i64: 1, 384>}, {pipeline_mode = #tpu.pipeline_mode<synchronous>, transform_indices = @transform_6, window_bounds = array<i64: 128, 384>}, {pipeline_mode = #tpu.pipeline_mode<synchronous>, transform_indices = @transform_7, window_bounds = array<i64: 1, 384>}, {transform_indices = @transform_8, window_bounds = array<i64: 128, 128>}]} {
    %c0_i32 = arith.constant 0 : i32
    %0 = arith.cmpi eq, %arg1, %c0_i32 : i32
    %1 = arith.extui %0 : i1 to i32
    %c0_i32_0 = arith.constant 0 : i32
    %2 = arith.cmpi ne, %1, %c0_i32_0 : i32
    scf.if %2 {
      %cst_16 = arith.constant 0.000000e+00 : f32
      %19 = vector.broadcast %cst_16 : f32 to vector<128x256xf32>
      %c0_17 = arith.constant 0 : index
      %c0_18 = arith.constant 0 : index
      %20 = vector.load %arg11[%c0_17, %c0_18] : memref<128x256xf32, #tpu.memory_space<vmem>>, vector<128x256xf32>
      tpu.vector_store %arg11[%c0_17, %c0_18], %19 {strides = array<i32>} : memref<128x256xf32, #tpu.memory_space<vmem>>, vector<128x256xf32>,
    } else {
    }
    %c0 = arith.constant 0 : index
    %c0_1 = arith.constant 0 : index
    %3 = vector.load %arg4[%c0, %c0_1] : memref<128x256xbf16, #tpu.memory_space<vmem>>, vector<128x256xbf16>
    %c0_2 = arith.constant 0 : index
    %c0_3 = arith.constant 0 : index
    %4 = vector.load %arg11[%c0_2, %c0_3] : memref<128x256xf32, #tpu.memory_space<vmem>>, vector<128x128xf32>
    %c0_4 = arith.constant 0 : index
    %c0_5 = arith.constant 0 : index
    %5 = vector.load %arg2[%c0_4, %c0_5] : memref<128x128xbf16, #tpu.memory_space<vmem>>, vector<128x128xbf16>
    %6 = vector.extract_strided_slice %3 {offsets = [0, 0], sizes = [128, 128], strides = [1, 1]} : vector<128x256xbf16> to vector<128x128xbf16>
    %cst = arith.constant dense<0.000000e+00> : vector<128x128xf32>
    %7 = tpu.matmul %5, %6, %cst {dimension_numbers = #tpu.dot_dimension_numbers<[1], [0], [0], [1], [0, 0, 1, 1], [], []>} : vector<128x128xbf16>, vector<128x128xbf16>, vector<128x128xf32> -> vector<128x128xf32>
    %8 = arith.addf %4, %7 : vector<128x128xf32>
    %c0_6 = arith.constant 0 : index
    %c0_7 = arith.constant 0 : index
    %9 = vector.load %arg11[%c0_6, %c0_7] : memref<128x256xf32, #tpu.memory_space<vmem>>, vector<128x128xf32>
    tpu.vector_store %arg11[%c0_6, %c0_7], %8 {strides = array<i32>} : memref<128x256xf32, #tpu.memory_space<vmem>>, vector<128x128xf32>,
    %c0_8 = arith.constant 0 : index
    %c128 = arith.constant 128 : index
    %10 = vector.load %arg11[%c0_8, %c128] : memref<128x256xf32, #tpu.memory_space<vmem>>, vector<128x128xf32>
    %c0_9 = arith.constant 0 : index
    %c0_10 = arith.constant 0 : index
    %11 = vector.load %arg3[%c0_9, %c0_10] : memref<128x128xbf16, #tpu.memory_space<vmem>>, vector<128x128xbf16>
    %12 = vector.extract_strided_slice %3 {offsets = [0, 128], sizes = [128, 128], strides = [1, 1]} : vector<128x256xbf16> to vector<128x128xbf16>
    %cst_11 = arith.constant dense<0.000000e+00> : vector<128x128xf32>
    %13 = tpu.matmul %11, %12, %cst_11 {dimension_numbers = #tpu.dot_dimension_numbers<[1], [0], [0], [1], [0, 0, 1, 1], [], []>} : vector<128x128xbf16>, vector<128x128xbf16>, vector<128x128xf32> -> vector<128x128xf32>
    %14 = arith.addf %10, %13 : vector<128x128xf32>
    %c0_12 = arith.constant 0 : index
    %c128_13 = arith.constant 128 : index
    %15 = vector.load %arg11[%c0_12, %c128_13] : memref<128x256xf32, #tpu.memory_space<vmem>>, vector<128x128xf32>
    tpu.vector_store %arg11[%c0_12, %c128_13], %14 {strides = array<i32>} : memref<128x256xf32, #tpu.memory_space<vmem>>, vector<128x128xf32>,
    %c0_i32_14 = arith.constant 0 : i32
    %16 = arith.cmpi eq, %arg1, %c0_i32_14 : i32
    %17 = arith.extui %16 : i1 to i32
    %c0_i32_15 = arith.constant 0 : i32
    %18 = arith.cmpi ne, %17, %c0_i32_15 : i32
    scf.if %18 {
      %c0_16 = arith.constant 0 : index
      %c0_17 = arith.constant 0 : index
      %19 = vector.load %arg11[%c0_16, %c0_17] : memref<128x256xf32, #tpu.memory_space<vmem>>, vector<128x256xf32>
      %20 = arith.truncf %19 : vector<128x256xf32> to vector<128x256xbf16>
      %c0_18 = arith.constant 0 : index
      %c0_19 = arith.constant 0 : index
      %21 = vector.load %arg6[%c0_18, %c0_19] : memref<256x384xbf16, #tpu.memory_space<vmem>>, vector<256x384xbf16>
      %cst_20 = arith.constant dense<0.000000e+00> : vector<128x384xf32>
      %22 = tpu.matmul %20, %21, %cst_20 {dimension_numbers = #tpu.dot_dimension_numbers<[1], [0], [0], [1], [0, 0, 1, 1], [], []>} : vector<128x256xbf16>, vector<256x384xbf16>, vector<128x384xf32> -> vector<128x384xf32>
      %c0_21 = arith.constant 0 : index
      %c0_22 = arith.constant 0 : index
      %23 = vector.load %arg7[%c0_21, %c0_22] : memref<1x384xf32, #tpu.memory_space<vmem>>, vector<1x384xf32>
      %24 = vector.broadcast %23 : vector<1x384xf32> to vector<128x384xf32>
      %25 = arith.addf %22, %24 : vector<128x384xf32>
      %c0_23 = arith.constant 0 : index
      %c0_24 = arith.constant 0 : index
      %26 = vector.load %arg5[%c0_23, %c0_24] : memref<128x128xbf16, #tpu.memory_space<vmem>>, vector<128x128xbf16>
      %c0_25 = arith.constant 0 : index
      %c0_26 = arith.constant 0 : index
      %27 = vector.load %arg8[%c0_25, %c0_26] : memref<128x384xbf16, #tpu.memory_space<vmem>>, vector<128x384xbf16>
      %cst_27 = arith.constant dense<0.000000e+00> : vector<128x384xf32>
      %28 = tpu.matmul %26, %27, %cst_27 {dimension_numbers = #tpu.dot_dimension_numbers<[1], [0], [0], [1], [0, 0, 1, 1], [], []>} : vector<128x128xbf16>, vector<128x384xbf16>, vector<128x384xf32> -> vector<128x384xf32>
      %c0_28 = arith.constant 0 : index
      %c0_29 = arith.constant 0 : index
      %29 = vector.load %arg9[%c0_28, %c0_29] : memref<1x384xf32, #tpu.memory_space<vmem>>, vector<1x384xf32>
      %30 = vector.broadcast %29 : vector<1x384xf32> to vector<128x384xf32>
      %31 = arith.addf %28, %30 : vector<128x384xf32>
      %32 = vector.extract_strided_slice %25 {offsets = [0, 0], sizes = [128, 128], strides = [1, 1]} : vector<128x384xf32> to vector<128x128xf32>
      %33 = vector.extract_strided_slice %25 {offsets = [0, 128], sizes = [128, 128], strides = [1, 1]} : vector<128x384xf32> to vector<128x128xf32>
      %34 = vector.extract_strided_slice %25 {offsets = [0, 256], sizes = [128, 128], strides = [1, 1]} : vector<128x384xf32> to vector<128x128xf32>
      %35 = vector.extract_strided_slice %31 {offsets = [0, 0], sizes = [128, 128], strides = [1, 1]} : vector<128x384xf32> to vector<128x128xf32>
      %36 = vector.extract_strided_slice %31 {offsets = [0, 128], sizes = [128, 128], strides = [1, 1]} : vector<128x384xf32> to vector<128x128xf32>
      %37 = vector.extract_strided_slice %31 {offsets = [0, 256], sizes = [128, 128], strides = [1, 1]} : vector<128x384xf32> to vector<128x128xf32>
      %38 = arith.addf %32, %35 : vector<128x128xf32>
      %39 = arith.negf %38 : vector<128x128xf32>
      %40 = math.exp %39 : vector<128x128xf32>
      %cst_30 = arith.constant 1.000000e+00 : f32
      %41 = vector.broadcast %cst_30 : f32 to vector<128x128xf32>
      %42 = arith.addf %41, %40 : vector<128x128xf32>
      %43 = arith.divf %41, %42 : vector<128x128xf32>
      %44 = arith.addf %33, %36 : vector<128x128xf32>
      %45 = arith.negf %44 : vector<128x128xf32>
      %46 = math.exp %45 : vector<128x128xf32>
      %cst_31 = arith.constant 1.000000e+00 : f32
      %47 = vector.broadcast %cst_31 : f32 to vector<128x128xf32>
      %48 = arith.addf %47, %46 : vector<128x128xf32>
      %49 = arith.divf %47, %48 : vector<128x128xf32>
      %50 = arith.mulf %43, %37 : vector<128x128xf32>
      %51 = arith.addf %34, %50 : vector<128x128xf32>
      %52 = math.tanh %51 : vector<128x128xf32>
      %cst_32 = arith.constant 1.000000e+00 : f32
      %53 = vector.broadcast %cst_32 : f32 to vector<128x128xf32>
      %54 = arith.subf %53, %49 : vector<128x128xf32>
      %55 = arith.extf %26 : vector<128x128xbf16> to vector<128x128xf32>
      %56 = arith.mulf %54, %55 : vector<128x128xf32>
      %57 = arith.mulf %49, %52 : vector<128x128xf32>
      %58 = arith.addf %56, %57 : vector<128x128xf32>
      %c0_33 = arith.constant 0 : index
      %c0_34 = arith.constant 0 : index
      %59 = vector.load %arg10[%c0_33, %c0_34] : memref<128x128xf32, #tpu.memory_space<vmem>>, vector<128x128xf32>
      tpu.vector_store %arg10[%c0_33, %c0_34], %58 {strides = array<i32>} : memref<128x128xf32, #tpu.memory_space<vmem>>, vector<128x128xf32>,
    } else {
    }
    return
  }
  func.func @transform_0(%arg0: i32, %arg1: i32) -> (i32, i32) {
    %c0_i32 = arith.constant 0 : i32
    return %arg0, %arg1 : i32, i32
  }
  func.func @transform_1(%arg0: i32, %arg1: i32) -> (i32, i32) {
    %c0_i32 = arith.constant 0 : i32
    return %arg0, %arg1 : i32, i32
  }
  func.func @transform_2(%arg0: i32, %arg1: i32) -> (i32, i32) {
    %c0_i32 = arith.constant 0 : i32
    %c0_i32_0 = arith.constant 0 : i32
    return %arg1, %c0_i32 : i32, i32
  }
  func.func @transform_3(%arg0: i32, %arg1: i32) -> (i32, i32) {
    %c0_i32 = arith.constant 0 : i32
    %c0_i32_0 = arith.constant 0 : i32
    return %arg0, %c0_i32 : i32, i32
  }
  func.func @transform_4(%arg0: i32, %arg1: i32) -> (i32, i32) {
    %c0_i32 = arith.constant 0 : i32
    %c0_i32_0 = arith.constant 0 : i32
    %c0_i32_1 = arith.constant 0 : i32
    return %c0_i32, %c0_i32_0 : i32, i32
  }
  func.func @transform_5(%arg0: i32, %arg1: i32) -> (i32, i32) {
    %c0_i32 = arith.constant 0 : i32
    %c0_i32_0 = arith.constant 0 : i32
    %c0_i32_1 = arith.constant 0 : i32
    return %c0_i32, %c0_i32_0 : i32, i32
  }
  func.func @transform_6(%arg0: i32, %arg1: i32) -> (i32, i32) {
    %c0_i32 = arith.constant 0 : i32
    %c0_i32_0 = arith.constant 0 : i32
    %c0_i32_1 = arith.constant 0 : i32
    return %c0_i32, %c0_i32_0 : i32, i32
  }
  func.func @transform_7(%arg0: i32, %arg1: i32) -> (i32, i32) {
    %c0_i32 = arith.constant 0 : i32
    %c0_i32_0 = arith.constant 0 : i32
    %c0_i32_1 = arith.constant 0 : i32
    return %c0_i32, %c0_i32_0 : i32, i32
  }
  func.func @transform_8(%arg0: i32, %arg1: i32) -> (i32, i32) {
    %c0_i32 = arith.constant 0 : i32
    %c0_i32_0 = arith.constant 0 : i32
    return %arg0, %c0_i32 : i32, i32
  }
}

</mosaic_0001>

<bundles_post_ra>
// kernel: tpu_custom_call.1
= control target key start
LH: loop header
LB: loop body
LE: loop exit
PB: predicated region body
PF: predicated region fallthrough
CT: control target
= control target key end

     0   :  { %13 = vsyncpa [#allocation4], 0  ;;  %s3549_s0 = inlined_call_operand.hbm [shape: bf16[128,128], index: 0, kind: input, shape index: {}]   ;;  %s3550_s1 = inlined_call_operand.hbm [shape: bf16[128,128], index: 1, kind: input, shape index: {}]   ;;  %s3551_s2 = inlined_call_operand.hbm [shape: bf16[128,256], index: 2, kind: input, shape index: {}]   ;;  %s3552_s3 = inlined_call_operand.hbm [shape: bf16[128,128], index: 3, kind: input, shape index: {}]   ;;  %s3553_s4 = inlined_call_operand.hbm [shape: bf16[256,384], index: 4, kind: input, shape index: {}]   ;;  %s3554_s5 = inlined_call_operand.vmem [shape: f32[1,384], index: 5, kind: input, shape index: {}]   ;;  %s3555_s6 = inlined_call_operand.hbm [shape: bf16[128,384], index: 6, kind: input, shape index: {}]   ;;  %s3556_s7 = inlined_call_operand.vmem [shape: f32[1,384], index: 7, kind: input, shape index: {}]   ;;  %s3557_s8 = inlined_call_operand.hbm [shape: f32[128,128], index: 8, kind: output, shape index: {}]  }
   0x1   :  { %14 = vsyncpa [#allocation7], 0 }
   0x2   :  { %15 = vsyncpa [#allocation10], 0 }
   0x3   :  { %16 = vsyncpa [#allocation13], 0 }
   0x4   :  { %17 = vsyncpa [#allocation5], 0  ;;  %s3039_s27 = smov [#allocation6]   ;;  %s3040_s29 = smov [#allocation9]  }
   0x5   :  { %s35_s28 = sshll.u32 %s3039_s27, 4  ;;  %s59_s30 = sshll.u32 %s3040_s29, 4  ;;  %s36_s28 = int_to_ptr.vmem [resolvable:$true] %s35_s28  ;;  %s3098_s30 = int_to_ptr.vmem [resolvable:$true] %s59_s30 }
   0x6   :  { %s2875_s11 = scalar_lea.hbm %s3550_s1, 1024 }
   0x7   :  { %p2876_p0 = scmp.ne.s32.totalorder %s3550_s1, %s2875_s11  ;;  %p2879_p1 = scmp.lt.u32.totalorder %s2875_s11, %s3550_s1 }
   0x9   :  { %p2881_p2 = pnand %p2879_p1, %p2876_p0 }
   0xb   :  { %2884 = shalt.err (!%p2881_p2)
}
   0xc   :  { %s2885_s16 = scalar_lea.vmem %s36_s28, 1024  ;;  %p2890_p4 = scmp.lt.s32.totalorder %s36_s28, %s36_s28 }
   0xd   :  { %p2886_p3 = scmp.ne.s32.totalorder %s36_s28, %s2885_s16  ;;  %p2891_p5 = scmp.lt.s32.totalorder %s2885_s16, %s2885_s16 }
   0xf   :  { %p2892_p6 = por %p2891_p5, %p2890_p4 }
  0x11   :  { %p2893_p7 = pnand %p2892_p6, %p2886_p3 }
  0x13   :  { %2896 = shalt.err (!%p2893_p7)
}
  0x14   :  { %s3041_s17 = smov 64   ;;  %s3042_s18 = smov 4  }
  0x15   :  { %41 = dma.hbm_to_vmem [thread:$0]  %s3550_s1, 1024, %s36_s28, [#allocation7], %s3041_s17, %s3041_s17, %s3042_s18  }
  0x16   :  { %s2897_s23 = scalar_lea.hbm %s3552_s3, 1024 }
  0x17   :  { %p2898_p8 = scmp.ne.s32.totalorder %s3552_s3, %s2897_s23  ;;  %p2901_p9 = scmp.lt.u32.totalorder %s2897_s23, %s3552_s3 }
  0x19   :  { %p2903_p10 = pnand %p2901_p9, %p2898_p8 }
  0x1b   :  { %2906 = shalt.err (!%p2903_p10)
}
  0x1c   :  { %s2907_s29 = scalar_lea.vmem %s3098_s30, 1024  ;;  %p2912_p12 = scmp.lt.s32.totalorder %s3098_s30, %s3098_s30 }
  0x1d   :  { %p2908_p11 = scmp.ne.s32.totalorder %s3098_s30, %s2907_s29  ;;  %p2913_p13 = scmp.lt.s32.totalorder %s2907_s29, %s2907_s29 }
  0x1f   :  { %p2914_p0 = por %p2913_p13, %p2912_p12 }
  0x21   :  { %p2915_p1 = pnand %p2914_p0, %p2908_p11 }
  0x23   :  { %2918 = shalt.err (!%p2915_p1)
}
  0x24   :  { %65 = dma.hbm_to_vmem [thread:$0]  %s3552_s3, 1024, %s3098_s30, [#allocation10], %s3041_s17, %s3041_s17, %s3042_s18  }
  0x25   :  { %s3043_s9 = smov [#allocation3]   ;;  %s3044_s11 = smov [#allocation8]  }
  0x26   :  { %s23_s10 = sshll.u32 %s3043_s9, 4  ;;  %s47_s12 = sshll.u32 %s3044_s11, 4  ;;  %s24_s10 = int_to_ptr.vmem [resolvable:$true] %s23_s10  ;;  %s3135_s12 = int_to_ptr.vmem [resolvable:$true] %s47_s12 }
  0x27   :  { %s2919_s15 = scalar_lea.hbm %s3549_s0, 1024 }
  0x28   :  { %p2920_p2 = scmp.ne.s32.totalorder %s3549_s0, %s2919_s15  ;;  %p2923_p3 = scmp.lt.u32.totalorder %s2919_s15, %s3549_s0 }
  0x2a   :  { %p2925_p4 = pnand %p2923_p3, %p2920_p2 }
  0x2c   :  { %2928 = shalt.err (!%p2925_p4)
}
  0x2d   :  { %s2929_s3 = scalar_lea.vmem %s24_s10, 1024  ;;  %p2934_p6 = scmp.lt.s32.totalorder %s24_s10, %s24_s10 }
  0x2e   :  { %p2930_p5 = scmp.ne.s32.totalorder %s24_s10, %s2929_s3  ;;  %p2935_p7 = scmp.lt.s32.totalorder %s2929_s3, %s2929_s3 }
  0x30   :  { %p2936_p8 = por %p2935_p7, %p2934_p6 }
  0x32   :  { %p2937_p9 = pnand %p2936_p8, %p2930_p5 }
  0x34   :  { %2940 = shalt.err (!%p2937_p9)
}
  0x35   :  { %29 = dma.hbm_to_vmem [thread:$0]  %s3549_s0, 1024, %s24_s10, [#allocation4], %s3041_s17, %s3041_s17, %s3042_s18  }
  0x36   :  { %s2941_s25 = scalar_lea.hbm %s3551_s2, 2048 }
  0x37   :  { %p2942_p10 = scmp.ne.s32.totalorder %s3551_s2, %s2941_s25  ;;  %p2945_p11 = scmp.lt.u32.totalorder %s2941_s25, %s3551_s2 }
  0x39   :  { %p2947_p12 = pnand %p2945_p11, %p2942_p10 }
  0x3b   :  { %2950 = shalt.err (!%p2947_p12)
}
  0x3c   :  { %s2951_s28 = scalar_lea.vmem %s3135_s12, 2048  ;;  %p2956_p0 = scmp.lt.s32.totalorder %s3135_s12, %s3135_s12 }
  0x3d   :  { %p2952_p13 = scmp.ne.s32.totalorder %s3135_s12, %s2951_s28  ;;  %p2957_p1 = scmp.lt.s32.totalorder %s2951_s28, %s2951_s28 }
  0x3f   :  { %p2958_p2 = por %p2957_p1, %p2956_p0 }
  0x41   :  { %p2959_p3 = pnand %p2958_p2, %p2952_p13 }
  0x43   :  { %2962 = shalt.err (!%p2959_p3)
}
  0x44   :  { %s3045_s0 = smov 128   ;;  %s3046_s17 = smov 8  }
  0x45   :  { %53 = dma.hbm_to_vmem [thread:$0]  %s3551_s2, 2048, %s3135_s12, [#allocation7], %s3045_s0, %s3045_s0, %s3046_s17  }
  0x46   :  { %s3047_s10 = smov [#allocation11]   ;;  %s2963_s15 = scalar_lea.hbm %s3553_s4, 6144 }
  0x47   :  { %s71_s11 = sshll.u32 %s3047_s10, 4  ;;  %p2964_p4 = scmp.ne.s32.totalorder %s3553_s4, %s2963_s15  ;;  %s72_s11 = int_to_ptr.vmem [resolvable:$true] %s71_s11 }
  0x48   :  { %p2967_p5 = scmp.lt.u32.totalorder %s2963_s15, %s3553_s4 }
  0x4a   :  { %p2969_p6 = pnand %p2967_p5, %p2964_p4 }
  0x4c   :  { %2972 = shalt.err (!%p2969_p6)
}
  0x4d   :  { %s2973_s3 = scalar_lea.vmem %s72_s11, 6144  ;;  %p2978_p8 = scmp.lt.s32.totalorder %s72_s11, %s72_s11 }
  0x4e   :  { %p2974_p7 = scmp.ne.s32.totalorder %s72_s11, %s2973_s3  ;;  %p2979_p9 = scmp.lt.s32.totalorder %s2973_s3, %s2973_s3 }
  0x50   :  { %p2980_p10 = por %p2979_p9, %p2978_p8 }
  0x52   :  { %p2981_p11 = pnand %p2980_p10, %p2974_p7 }
  0x54   :  { %2984 = shalt.err (!%p2981_p11)
}
  0x55   :  { %s3048_s2 = smov 192   ;;  %s3049_s12 = smov 12  }
  0x56   :  { %77 = dma.hbm_to_vmem [thread:$0]  %s3553_s4, 6144, %s72_s11, [#allocation10], %s3048_s2, %s3048_s2, %s3049_s12  }
  0x57   :  { %s3050_s23 = smov [#allocation12]   ;;  %s2985_s27 = scalar_lea.hbm %s3555_s6, 3072 }
  0x58   :  { %s85_s24 = sshll.u32 %s3050_s23, 4  ;;  %p2986_p12 = scmp.ne.s32.totalorder %s3555_s6, %s2985_s27  ;;  %s86_s24 = int_to_ptr.vmem [resolvable:$true] %s85_s24 }
  0x59   :  { %p2989_p13 = scmp.lt.u32.totalorder %s2985_s27, %s3555_s6 }
  0x5b   :  { %p2991_p0 = pnand %p2989_p13, %p2986_p12 }
  0x5d   :  { %2994 = shalt.err (!%p2991_p0)
}
  0x5e   :  { %s2995_s9 = scalar_lea.vmem %s86_s24, 3072  ;;  %p3000_p2 = scmp.lt.s32.totalorder %s86_s24, %s86_s24 }
  0x5f   :  { %p2996_p1 = scmp.ne.s32.totalorder %s86_s24, %s2995_s9  ;;  %p3001_p3 = scmp.lt.s32.totalorder %s2995_s9, %s2995_s9 }
  0x61   :  { %p3002_p4 = por %p3001_p3, %p3000_p2 }
  0x63   :  { %p3003_p5 = pnand %p3002_p4, %p2996_p1 }
  0x65   :  { %3006 = shalt.err (!%p3003_p5)
}
  0x66   :  { %91 = dma.hbm_to_vmem [thread:$0]  %s3555_s6, 3072, %s86_s24, [#allocation13], %s3048_s2, %s3048_s2, %s3049_s12  }
  0x67   :  { %3029 = dma.done.wait [#allocation4], 1024  }
  0x68   :  { %3030 = vsyncadd [#allocation4], 4294966272 }
  0x69   :  { %3031 = dma.done.wait [#allocation7], 3072  }
  0x6a   :  { %3032 = vsyncadd [#allocation7], 4294964224 }
  0x6b   :  { %3033 = dma.done.wait [#allocation10], 7168  }
  0x6c   :  { %3034 = vsyncadd [#allocation10], 4294960128 }
  0x6d   :  { %3035 = dma.done.wait [#allocation13], 3072  }
  0x6e   :  { %3036 = vsyncadd [#allocation13], 4294964224  ;;  %v2562_v0 = vld [vmem:[#allocation8] ss:$8 sps:$4 sm:$0xff]   ;;  %v2565_v1 = vld [vmem:[#allocation8 + $0x10] ss:$8 sps:$4 sm:$0xff]  }
  0x6f   :  { %2356 = vmatprep.subr.bf16.mxu1 %v2562_v0  ;;  %v2567_v2 = vld [vmem:[#allocation8 + $0x20] ss:$8 sps:$4 sm:$0xff]   ;;  %v2569_v3 = vld [vmem:[#allocation8 + $0x30] ss:$8 sps:$4 sm:$0xff]   ;;  %v2564_v9 = vld [vmem:[#allocation8 + $0x4] ss:$8 sps:$4 sm:$0xff]  }
  0x70   :  { %2357 = vmatpush3.bf16.msra.mxu1 %v2562_v0  ;;  %v2579_v4 = vld [vmem:[#allocation3] sm:$0xff]   ;;  %v2573_v6 = vld [vmem:[#allocation8 + $0x50] ss:$8 sps:$4 sm:$0xff]   ;;  %v2605_v12 = vld [vmem:[#allocation11 + $0x1c] ss:$12 sps:$4 sm:$0xff]  }
  0x71   :  { %2358 = vmatprep.subr.bf16.mxu1 %v2565_v1  ;;  %2372 = vmatprep.mubr.bf16.mxu1 %v2579_v4  ;;  %v2571_v5 = vld [vmem:[#allocation8 + $0x40] ss:$8 sps:$4 sm:$0xff]   ;;  %v2577_v8 = vld [vmem:[#allocation8 + $0x70] ss:$8 sps:$4 sm:$0xff]   ;;  %v2581_v15 = vld [vmem:[#allocation8 + $0x14] ss:$8 sps:$4 sm:$0xff]  }
  0x72   :  { %v2575_v7 = vld [vmem:[#allocation8 + $0x60] ss:$8 sps:$4 sm:$0xff]   ;;  %v2602_v10 = vld [vmem:[#allocation11 + $0x4] ss:$12 sps:$4 sm:$0xff]   ;;  %v2611_v20 = vld [vmem:[#allocation11 + $0x4c] ss:$12 sps:$4 sm:$0xff]  }
  0x73   :  { %v2604_v11 = vld [vmem:[#allocation11] ss:$12 sps:$4 sm:$0xff]   ;;  %1051 = vmatprep.subr.bf16.mxu0 %v2602_v10  ;;  %v2607_v14 = vld [vmem:[#allocation11 + $0x18] ss:$12 sps:$4 sm:$0xff]   ;;  %v2582_v16 = vld [vmem:[#allocation3 + $0x10] sm:$0xff]  }
  0x74   :  { %2359 = vmatpush3.bf16.msra.mxu1 %v2565_v1  ;;  %v2580_v13 = vld [vmem:[#allocation3 + $0x8] sm:$0xff]   ;;  %1052 = vmatpush1.bf16.msra.mxu0 %v2604_v11  ;;  %v2608_v17 = vld [vmem:[#allocation11 + $0x34] ss:$12 sps:$4 sm:$0xff]   ;;  %v2610_v19 = vld [vmem:[#allocation11 + $0x30] ss:$12 sps:$4 sm:$0xff]  }
  0x75   :  { %2360 = vmatprep.subr.bf16.mxu1 %v2567_v2  ;;  %1053 = vmatprep.subr.bf16.mxu0 %v2605_v12  ;;  %v2584_v18 = vld [vmem:[#allocation8 + $0x24] ss:$8 sps:$4 sm:$0xff]   ;;  %v2583_v21 = vld [vmem:[#allocation3 + $0x18] sm:$0xff]   ;;  %v2613_v22 = vld [vmem:[#allocation11 + $0x48] ss:$12 sps:$4 sm:$0xff]  }
  0x76   :  { %v2586_v23 = vld [vmem:[#allocation3 + $0x20] sm:$0xff]   ;;  %v2585_v24 = vld [vmem:[#allocation8 + $0x34] ss:$8 sps:$4 sm:$0xff]   ;;  %v2587_v29 = vld [vmem:[#allocation3 + $0x28] sm:$0xff]  }
  0x77   :  { %v2614_v25 = vld [vmem:[#allocation11 + $0x64] ss:$12 sps:$4 sm:$0xff]   ;;  %v2616_v26 = vld [vmem:[#allocation11 + $0x60] ss:$12 sps:$4 sm:$0xff]   ;;  %v2617_v27 = vld [vmem:[#allocation11 + $0x7c] ss:$12 sps:$4 sm:$0xff]  }
  0x78   :  { %2361 = vmatpush3.bf16.msra.mxu1 %v2567_v2  ;;  %1054 = vmatpush1.bf16.msra.mxu0 %v2607_v14  ;;  %v2588_v28 = vld [vmem:[#allocation8 + $0x44] ss:$8 sps:$4 sm:$0xff]   ;;  %v2590_v31 = vld [vmem:[#allocation3 + $0x30] sm:$0xff]   ;;  %v2591_v35 = vld [vmem:[#allocation3 + $0x38] sm:$0xff]  }
  0x79   :  { %2362 = vmatprep.subr.bf16.mxu1 %v2569_v3  ;;  %1055 = vmatprep.subr.bf16.mxu0 %v2608_v17  ;;  %v2619_v30 = vld [vmem:[#allocation11 + $0x78] ss:$12 sps:$4 sm:$0xff]   ;;  %v2589_v32 = vld [vmem:[#allocation8 + $0x54] ss:$8 sps:$4 sm:$0xff]   ;;  %v2595_v38 = vld [vmem:[#allocation6 + $0x8] sm:$0xff]  }
  0x7a   :  { %v2620_v33 = vld [vmem:[#allocation11 + $0x94] ss:$12 sps:$4 sm:$0xff]   ;;  %v2592_v34 = vld [vmem:[#allocation8 + $0x64] ss:$8 sps:$4 sm:$0xff]   ;;  %v2597_v40 = vld [vmem:[#allocation6 + $0x18] sm:$0xff]  }
  0x7b   :  { %v2594_v36 = vld [vmem:[#allocation6] sm:$0xff]   ;;  %v2593_v37 = vld [vmem:[#allocation8 + $0x74] ss:$8 sps:$4 sm:$0xff]   ;;  %v2599_v42 = vld [vmem:[#allocation6 + $0x28] sm:$0xff]  }
  0x7c   :  { %2363 = vmatpush3.bf16.msra.mxu1 %v2569_v3  ;;  %1056 = vmatpush1.bf16.msra.mxu0 %v2610_v19  ;;  %v2596_v39 = vld [vmem:[#allocation6 + $0x10] sm:$0xff]   ;;  %v2598_v41 = vld [vmem:[#allocation6 + $0x20] sm:$0xff]   ;;  %v2601_v44 = vld [vmem:[#allocation6 + $0x38] sm:$0xff]  }
  0x7d   :  { %2364 = vmatprep.subr.bf16.mxu1 %v2571_v5  ;;  %1057 = vmatprep.subr.bf16.mxu0 %v2611_v20  ;;  %v2600_v43 = vld [vmem:[#allocation6 + $0x30] sm:$0xff]   ;;  %v2623_v46 = vld [vmem:[#allocation11 + $0xac] ss:$12 sps:$4 sm:$0xff]   ;;  %v2631_v52 = vld [vmem:[#allocation11 + $0xdc] ss:$12 sps:$4 sm:$0xff]  }
  0x7e   :  { %v2622_v45 = vld [vmem:[#allocation11 + $0x90] ss:$12 sps:$4 sm:$0xff]   ;;  %v2625_v47 = vld [vmem:[#allocation11 + $0xa8] ss:$12 sps:$4 sm:$0xff]   ;;  %v2629_v50 = vld [vmem:[#allocation11 + $0xc0] ss:$12 sps:$4 sm:$0xff]  }
  0x7f   :  { %v2626_v48 = vld [vmem:[#allocation11 + $0xc4] ss:$12 sps:$4 sm:$0xff]   ;;  %v2628_v49 = vld [vmem:[#allocation11 + $0xc8] ss:$12 sps:$4 sm:$0xff]   ;;  %v2633_v53 = vld [vmem:[#allocation11 + $0xe0] ss:$12 sps:$4 sm:$0xff]  }
  0x80   :  { %2365 = vmatpush3.bf16.msra.mxu1 %v2571_v5  ;;  %1058 = vmatpush1.bf16.msra.mxu0 %v2613_v22  ;;  %v2630_v51 = vld [vmem:[#allocation11 + $0x8] ss:$12 sps:$4 sm:$0xff]   ;;  %v2634_v54 = vld [vmem:[#allocation11 + $0xd8] ss:$12 sps:$4 sm:$0xff]   ;;  %v2635_v55 = vld [vmem:[#allocation11 + $0x20] ss:$12 sps:$4 sm:$0xff]  }
  0x81   :  { %2366 = vmatprep.subr.bf16.mxu1 %v2573_v6  ;;  %1059 = vmatprep.subr.bf16.mxu0 %v2614_v25  ;;  %v2636_v56 = vld [vmem:[#allocation11 + $0xf4] ss:$12 sps:$4 sm:$0xff]   ;;  %v2638_v57 = vld [vmem:[#allocation11 + $0xf8] ss:$12 sps:$4 sm:$0xff]   ;;  %v2639_v58 = vld [vmem:[#allocation11 + $0xf0] ss:$12 sps:$4 sm:$0xff]  }
  0x82   :  { %v2640_v59 = vld [vmem:[#allocation11 + $0x38] ss:$12 sps:$4 sm:$0xff]   ;;  %v2643_v61 = vld [vmem:[#allocation11 + $0x110] ss:$12 sps:$4 sm:$0xff]   ;;  %v2644_v62 = vld [vmem:[#allocation11 + $0x108] ss:$12 sps:$4 sm:$0xff]  }
  0x83   :  { %v2641_v60 = vld [vmem:[#allocation11 + $0x10c] ss:$12 sps:$4 sm:$0xff]   ;;  %v2645_v63 = vld [vmem:[#allocation11 + $0x50] ss:$12 sps:$4 sm:$0xff]   ;;  %v2648_v1 = vld [vmem:[#allocation11 + $0x128] ss:$12 sps:$4 sm:$0xff]  }
  0x84   :  { %2367 = vmatpush3.bf16.msra.mxu1 %v2573_v6  ;;  %1060 = vmatpush1.bf16.msra.mxu0 %v2616_v26  ;;  %v2646_v0 = vld [vmem:[#allocation11 + $0x124] ss:$12 sps:$4 sm:$0xff]   ;;  %v2649_v2 = vld [vmem:[#allocation11 + $0x120] ss:$12 sps:$4 sm:$0xff]   ;;  %v2650_v3 = vld [vmem:[#allocation11 + $0x68] ss:$12 sps:$4 sm:$0xff]  }
  0x85   :  { %2368 = vmatprep.subr.bf16.mxu1 %v2575_v7  ;;  %1061 = vmatprep.subr.bf16.mxu0 %v2617_v27  ;;  %v2651_v4 = vld [vmem:[#allocation11 + $0x13c] ss:$12 sps:$4 sm:$0xff]   ;;  %v2653_v5 = vld [vmem:[#allocation11 + $0x140] ss:$12 sps:$4 sm:$0xff]   ;;  %v2654_v6 = vld [vmem:[#allocation11 + $0x138] ss:$12 sps:$4 sm:$0xff]  }
  0x86   :  { %v2659_v10 = vld [vmem:[#allocation11 + $0x150] ss:$12 sps:$4 sm:$0xff]   ;;  %v2660_v11 = vld [vmem:[#allocation11 + $0x98] ss:$12 sps:$4 sm:$0xff]   ;;  %v2664_v14 = vld [vmem:[#allocation11 + $0x168] ss:$12 sps:$4 sm:$0xff]  }
  0x87   :  { %v2661_v12 = vld [vmem:[#allocation11 + $0x16c] ss:$12 sps:$4 sm:$0xff]   ;;  %v2690_v17 = vld [vmem:[#allocation12 + $0x8] ss:$12 sps:$4 sm:$0xff]  }
  0x88   :  { %2369 = vmatpush3.bf16.msra.mxu1 %v2575_v7  ;;  %1062 = vmatpush1.bf16.msra.mxu0 %v2619_v30  ;;  %v2655_v7 = vld [vmem:[#allocation11 + $0x80] ss:$12 sps:$4 sm:$0xff]  }
  0x89   :  { %2370 = vmatprep.subr.bf16.mxu1 %v2577_v8  ;;  %1063 = vmatprep.subr.bf16.mxu0 %v2620_v33 }
  0x8c   :  { %2371 = vmatpush3.bf16.msra.mxu1 %v2577_v8  ;;  %1064 = vmatpush1.bf16.msra.mxu0 %v2622_v45  ;;  %v2656_v8 = vld [vmem:[#allocation11 + $0x154] ss:$12 sps:$4 sm:$0xff]  }
  0x8d   :  { %2388 = vmatprep.subr.bf16.mxu1 %v2564_v9  ;;  %1065 = vmatprep.subr.bf16.mxu0 %v2623_v46 }
  0x8f   :  { %2373 = vmatmul.mubr.bf16.vlgmr.msra.gmra.mrb[0].mxu1 %v2580_v13  ;;  %v2663_v13 = vld [vmem:[#allocation11 + $0x170] ss:$12 sps:$4 sm:$0xff]  }
  0x90   :  { %2389 = vmatpush3.bf16.msra.mxu1 %v2564_v9  ;;  %2376 = vmatprep.mubr.bf16.mxu1 %v2582_v16  ;;  %v2658_v9 = vld [vmem:[#allocation11 + $0x158] ss:$12 sps:$4 sm:$0xff]  }
  0x91   :  { %2390 = vmatprep.subr.bf16.mxu1 %v2581_v15  ;;  %1066 = vmatpush1.bf16.msra.mxu0 %v2625_v47  ;;  %v2668_v16 = vld [vmem:[#allocation12 + $0x4] ss:$12 sps:$4 sm:$0xff]  }
  0x92   :  { %1067 = vmatprep.subr.bf16.mxu0 %v2626_v48  ;;  %v2666_v48 = vld [vmem:[#allocation12] ss:$12 sps:$4 sm:$0xff]  }
  0x94   :  { %2391 = vmatpush3.bf16.msra.mxu1 %v2581_v15  ;;  %v2665_v15 = vld [vmem:[#allocation11 + $0xb0] ss:$12 sps:$4 sm:$0xff]  }
  0x95   :  { %2392 = vmatprep.subr.bf16.mxu1 %v2584_v18  ;;  %1068 = vmatpush1.bf16.msra.mxu0 %v2629_v50  ;;  %v2691_v50 = vld [vmem:[#allocation12 + $0x20] ss:$12 sps:$4 sm:$0xff]  }
  0x96   :  { %1069 = vmatprep.subr.bf16.mxu0 %v2631_v52 }
  0x97   :  { %2377 = vmatmul.mubr.bf16.gmra.mrb[4].mxu1 %v2583_v21 }
  0x98   :  { %2393 = vmatpush3.bf16.msra.mxu1 %v2584_v18  ;;  %2380 = vmatprep.mubr.bf16.mxu1 %v2586_v23 }
  0x99   :  { %2394 = vmatprep.subr.bf16.mxu1 %v2585_v24  ;;  %1070 = vmatpush1.bf16.msra.mxu0 %v2634_v54 }
  0x9a   :  { %1071 = vmatprep.subr.bf16.mxu0 %v2636_v56  ;;  %v2693_v56 = vld [vmem:[#allocation12 + $0x38] ss:$12 sps:$4 sm:$0xff]  }
  0x9c   :  { %2395 = vmatpush3.bf16.msra.mxu1 %v2585_v24 }
  0x9d   :  { %2396 = vmatprep.subr.bf16.mxu1 %v2588_v28  ;;  %1072 = vmatpush1.bf16.msra.mxu0 %v2639_v58 }
  0x9e   :  { %1073 = vmatprep.subr.bf16.mxu0 %v2641_v60  ;;  %v2672_v60 = vld [vmem:[#allocation12 + $0x30] ss:$12 sps:$4 sm:$0xff]  }
  0x9f   :  { %2381 = vmatmul.mubr.bf16.gmra.mrb[8].mxu1 %v2587_v29 }
  0xa0   :  { %2397 = vmatpush3.bf16.msra.mxu1 %v2588_v28  ;;  %2384 = vmatprep.mubr.bf16.mxu1 %v2590_v31 }
  0xa1   :  { %2398 = vmatprep.subr.bf16.mxu1 %v2589_v32  ;;  %1074 = vmatpush1.bf16.msra.mxu0 %v2644_v62  ;;  %v2694_v62 = vld [vmem:[#allocation12 + $0x50] ss:$12 sps:$4 sm:$0xff]  }
  0xa2   :  { %1075 = vmatprep.subr.bf16.mxu0 %v2646_v0 }
  0xa4   :  { %2399 = vmatpush3.bf16.msra.mxu1 %v2589_v32 }
  0xa5   :  { %2400 = vmatprep.subr.bf16.mxu1 %v2592_v34  ;;  %1076 = vmatpush1.bf16.msra.mxu0 %v2649_v2 }
  0xa6   :  { %1077 = vmatprep.subr.bf16.mxu0 %v2651_v4  ;;  %v2696_v4 = vld [vmem:[#allocation12 + $0x68] ss:$12 sps:$4 sm:$0xff]  }
  0xa7   :  { %2385 = vmatmul.mubr.bf16.gmra.mrb[12].mxu1 %v2591_v35 }
  0xa8   :  { %2401 = vmatpush3.bf16.msra.mxu1 %v2592_v34  ;;  %2404 = vmatprep.mubr.bf16.mxu1 %v2594_v36 }
  0xa9   :  { %2402 = vmatprep.subr.bf16.mxu1 %v2593_v37  ;;  %1078 = vmatpush1.bf16.msra.mxu0 %v2654_v6 }
  0xaa   :  { %1079 = vmatprep.subr.bf16.mxu0 %v2656_v8  ;;  %v2678_v8 = vld [vmem:[#allocation12 + $0x60] ss:$12 sps:$4 sm:$0xff]  }
  0xac   :  { %2403 = vmatpush3.bf16.msra.mxu1 %v2593_v37 }
  0xad   :  { %2276 = vmatprep.subr.bf16.mxu1 %v2628_v49  ;;  %1080 = vmatpush1.bf16.msra.mxu0 %v2659_v10  ;;  %v2671_v49 = vld [vmem:[#allocation12 + $0x1c] ss:$12 sps:$4 sm:$0xff]   ;;  %v2697_v10 = vld [vmem:[#allocation12 + $0x80] ss:$12 sps:$4 sm:$0xff]  }
  0xae   :  { %1081 = vmatprep.subr.bf16.mxu0 %v2661_v12 }
  0xaf   :  { %2405 = vmatmul.mubr.bf16.vlgmr.msra.gmra.mrb[16].mxu1 %v2595_v38 }
  0xb0   :  { %2408 = vmatprep.mubr.bf16.mxu1 %v2596_v39  ;;  %2277 = vmatpush3.bf16.msra.mxu1 %v2630_v51 }
  0xb1   :  { %2278 = vmatprep.subr.bf16.mxu1 %v2633_v53  ;;  %1082 = vmatpush1.bf16.msra.mxu0 %v2664_v14  ;;  %v2669_v53 = vld [vmem:[#allocation12 + $0x18] ss:$12 sps:$4 sm:$0xff]  }
  0xb2   :  { %1502 = vmatprep.subr.bf16.mxu0 %v2668_v16  ;;  %v2699_v16 = vld [vmem:[#allocation12 + $0x98] ss:$12 sps:$4 sm:$0xff]  }
  0xb4   :  { %2279 = vmatpush3.bf16.msra.mxu1 %v2635_v55  ;;  %v2674_v55 = vld [vmem:[#allocation12 + $0x34] ss:$12 sps:$4 sm:$0xff]  }
  0xb5   :  { %2280 = vmatprep.subr.bf16.mxu1 %v2638_v57 }
  0xb7   :  { %2409 = vmatmul.mubr.bf16.gmra.mrb[20].mxu1 %v2597_v40 }
  0xb8   :  { %2412 = vmatprep.mubr.bf16.mxu1 %v2598_v41  ;;  %2281 = vmatpush3.bf16.msra.mxu1 %v2640_v59 }
  0xb9   :  { %2282 = vmatprep.subr.bf16.mxu1 %v2643_v61  ;;  %v2677_v61 = vld [vmem:[#allocation12 + $0x4c] ss:$12 sps:$4 sm:$0xff]  }
  0xbc   :  { %2283 = vmatpush3.bf16.msra.mxu1 %v2645_v63 }
  0xbd   :  { %2284 = vmatprep.subr.bf16.mxu1 %v2648_v1  ;;  %v2675_v1 = vld [vmem:[#allocation12 + $0x48] ss:$12 sps:$4 sm:$0xff]  }
  0xbf   :  { %2413 = vmatmul.mubr.bf16.gmra.mrb[24].mxu1 %v2599_v42 }
  0xc0   :  { %2416 = vmatprep.mubr.bf16.mxu1 %v2600_v43  ;;  %2285 = vmatpush3.bf16.msra.mxu1 %v2650_v3  ;;  %v2680_v3 = vld [vmem:[#allocation12 + $0x64] ss:$12 sps:$4 sm:$0xff]  }
  0xc1   :  { %2286 = vmatprep.subr.bf16.mxu1 %v2653_v5 }
  0xc4   :  { %2287 = vmatpush3.bf16.msra.mxu1 %v2655_v7 }
  0xc5   :  { %2288 = vmatprep.subr.bf16.mxu1 %v2658_v9  ;;  %v2683_v9 = vld [vmem:[#allocation12 + $0x7c] ss:$12 sps:$4 sm:$0xff]  }
  0xc7   :  { %2417 = vmatmul.mubr.bf16.gmra.mrb[28].mxu1 %v2601_v44 }
  0xc8   :  { %2289 = vmatpush3.bf16.msra.mxu1 %v2660_v11 }
  0xc9   :  { %2290 = vmatprep.subr.bf16.mxu1 %v2663_v13  ;;  %v2681_v13 = vld [vmem:[#allocation12 + $0x78] ss:$12 sps:$4 sm:$0xff]  }
  0xcc   :  { %2291 = vmatpush3.bf16.msra.mxu1 %v2665_v15  ;;  %v2686_v15 = vld [vmem:[#allocation12 + $0x94] ss:$12 sps:$4 sm:$0xff]  }
  0xcd   :  { %2420 = vmatprep.subr.bf16.mxu1 %v2690_v17 }
 0x162   :  { %v2374_v18 = vpop.f32.mrb[0].mxu1 }
 0x163   :  { %v327_v19 = vpop.f32.mrb[1].mxu1 }
 0x164   :  { %v2375_v20 = vpop.f32.mrb[2].mxu1 }
 0x165   :  { %v700_v21 = vpack.c.bf16 %v2375_v20, %v2374_v18  ;;  %v330_v22 = vpop.f32.mrb[3].mxu1  ;;  %v2684_v20 = vld [vmem:[#allocation12 + $0x90] ss:$12 sps:$4 sm:$0xff]  }
 0x166   :  { %v698_v23 = vpack.c.bf16 %v330_v22, %v327_v19  ;;  %v2700_v22 = vld [vmem:[#allocation12 + $0xb0] ss:$12 sps:$4 sm:$0xff]  }
 0x16a   :  { %v2378_v24 = vpop.f32.mrb[4].mxu1 }
 0x16b   :  { %v343_v25 = vpop.f32.mrb[5].mxu1 }
 0x16c   :  { %v2379_v26 = vpop.f32.mrb[6].mxu1 }
 0x16d   :  { %v3196_v27 = vpack.c.bf16 %v2379_v26, %v2378_v24  ;;  %v346_v28 = vpop.f32.mrb[7].mxu1  ;;  %v3218_v24 = vld [vmem:[#allocation9] sm:$0xff]   ;;  %v3223_v26 = vld [vmem:[#allocation9 + $0x8] sm:$0xff]  }
 0x16e   :  { %v3198_v29 = vpack.c.bf16 %v346_v28, %v343_v25  ;;  %v3051_v25 = vmov 0   ;;  %v3230_v28 = vld [vmem:[#allocation9 + $0x18] sm:$0xff]  }
 0x172   :  { %v2382_v30 = vpop.f32.mrb[8].mxu1 }
 0x173   :  { %v359_v31 = vpop.f32.mrb[9].mxu1 }
 0x174   :  { %v2383_v32 = vpop.f32.mrb[10].mxu1 }
 0x175   :  { %v3200_v33 = vpack.c.bf16 %v2383_v32, %v2382_v30  ;;  %v362_v34 = vpop.f32.mrb[11].mxu1  ;;  %v3237_v30 = vld [vmem:[#allocation9 + $0x28] sm:$0xff]   ;;  %v3244_v32 = vld [vmem:[#allocation9 + $0x38] sm:$0xff]  }
 0x176   :  { %v3202_v35 = vpack.c.bf16 %v362_v34, %v359_v31  ;;  %v3239_v31 = vld [vmem:[#allocation9 + $0x30] sm:$0xff]  }
 0x17a   :  { %v2386_v36 = vpop.f32.mrb[12].mxu1 }
 0x17b   :  { %v375_v37 = vpop.f32.mrb[13].mxu1 }
 0x17c   :  { %v2387_v38 = vpop.f32.mrb[14].mxu1 }
 0x17d   :  { %v3204_v39 = vpack.c.bf16 %v2387_v38, %v2386_v36  ;;  %v378_v40 = vpop.f32.mrb[15].mxu1 }
 0x17e   :  { %v3206_v41 = vpack.c.bf16 %v378_v40, %v375_v37 }
 0x182   :  { %v2406_v42 = vpop.f32.mrb[16].mxu1 }
 0x183   :  { %v568_v43 = vpop.f32.mrb[17].mxu1 }
 0x184   :  { %v2407_v44 = vpop.f32.mrb[18].mxu1 }
 0x185   :  { %v701_v45 = vpack.c.bf16 %v2407_v44, %v2406_v42  ;;  %v571_v46 = vpop.f32.mrb[19].mxu1 }
 0x186   :  { %v699_v47 = vpack.c.bf16 %v571_v46, %v568_v43 }
 0x188   :  { %1083 = vmatprep.mubr.bf16.mxu0 %v699_v47  ;;  %1196 = vmatprep.mubr.bf16.mxu1 %v699_v47 }
 0x189   :  { %1084 = vmatmul.mubr.bf16.vlgmr.msra.gmra.mrb[0].mxu0 %v698_v23  ;;  %1197 = vmatmul.mubr.bf16.vlgmr.msra.gmra.mrb[32].mxu1 %v698_v23  ;;  %v2687_v23 = vld [vmem:[#allocation12 + $0xa8] ss:$12 sps:$4 sm:$0xff]  }
 0x18a   :  { %1093 = vmatprep.mubr.bf16.mxu0 %v701_v45  ;;  %1204 = vmatprep.mubr.bf16.mxu1 %v701_v45  ;;  %v2410_v51 = vpop.f32.mrb[20].mxu1 }
 0x18b   :  { %1503 = vmatpush1.bf16.msra.mxu0 %v2666_v48  ;;  %v584_v52 = vpop.f32.mrb[21].mxu1  ;;  %2421 = vmatpush3.bf16.msra.mxu1 %v2690_v17 }
 0x18c   :  { %1504 = vmatprep.subr.bf16.mxu0 %v2671_v49  ;;  %v2411_v54 = vpop.f32.mrb[22].mxu1  ;;  %2422 = vmatprep.subr.bf16.mxu1 %v2691_v50 }
 0x18d   :  { %v705_v57 = vpack.c.bf16 %v2411_v54, %v2410_v51  ;;  %v587_v58 = vpop.f32.mrb[23].mxu1 }
 0x18e   :  { %v703_v59 = vpack.c.bf16 %v587_v58, %v584_v52 }
 0x18f   :  { %1505 = vmatpush1.bf16.msra.mxu0 %v2669_v53  ;;  %2423 = vmatpush3.bf16.msra.mxu1 %v2691_v50 }
 0x190   :  { %1506 = vmatprep.subr.bf16.mxu0 %v2674_v55  ;;  %2424 = vmatprep.subr.bf16.mxu1 %v2693_v56 }
 0x191   :  { %1094 = vmatmul.mubr.bf16.gmra.mrb[4].mxu0 %v700_v21  ;;  %1205 = vmatmul.mubr.bf16.gmra.mrb[36].mxu1 %v700_v21  ;;  %v2689_v21 = vld [vmem:[#allocation12 + $0xac] ss:$12 sps:$4 sm:$0xff]  }
 0x192   :  { %1103 = vmatprep.mubr.bf16.mxu0 %v703_v59  ;;  %1212 = vmatprep.mubr.bf16.mxu1 %v703_v59  ;;  %v2414_v63 = vpop.f32.mrb[24].mxu1 }
 0x193   :  { %1507 = vmatpush1.bf16.msra.mxu0 %v2672_v60  ;;  %v600_v0 = vpop.f32.mrb[25].mxu1  ;;  %2425 = vmatpush3.bf16.msra.mxu1 %v2693_v56 }
 0x194   :  { %1508 = vmatprep.subr.bf16.mxu0 %v2677_v61  ;;  %v2415_v2 = vpop.f32.mrb[26].mxu1  ;;  %2426 = vmatprep.subr.bf16.mxu1 %v2694_v62 }
 0x195   :  { %v709_v5 = vpack.c.bf16 %v2415_v2, %v2414_v63  ;;  %v603_v6 = vpop.f32.mrb[27].mxu1 }
 0x196   :  { %v707_v7 = vpack.c.bf16 %v603_v6, %v600_v0 }
 0x197   :  { %1509 = vmatpush1.bf16.msra.mxu0 %v2675_v1  ;;  %2427 = vmatpush3.bf16.msra.mxu1 %v2694_v62 }
 0x198   :  { %1510 = vmatprep.subr.bf16.mxu0 %v2680_v3  ;;  %2428 = vmatprep.subr.bf16.mxu1 %v2696_v4 }
 0x199   :  { %1104 = vmatmul.mubr.bf16.gmra.mrb[8].mxu0 %v3198_v29  ;;  %1213 = vmatmul.mubr.bf16.gmra.mrb[40].mxu1 %v3198_v29  ;;  %v3232_v29 = vld [vmem:[#allocation9 + $0x20] sm:$0xff]  }
 0x19a   :  { %1113 = vmatprep.mubr.bf16.mxu0 %v705_v57  ;;  %1220 = vmatprep.mubr.bf16.mxu1 %v705_v57  ;;  %v2418_v11 = vpop.f32.mrb[28].mxu1 }
 0x19b   :  { %1511 = vmatpush1.bf16.msra.mxu0 %v2678_v8  ;;  %v616_v12 = vpop.f32.mrb[29].mxu1  ;;  %2429 = vmatpush3.bf16.msra.mxu1 %v2696_v4 }
 0x19c   :  { %1512 = vmatprep.subr.bf16.mxu0 %v2683_v9  ;;  %v2419_v14 = vpop.f32.mrb[30].mxu1  ;;  %2430 = vmatprep.subr.bf16.mxu1 %v2697_v10 }
 0x19d   :  { %v713_v17 = vpack.c.bf16 %v2419_v14, %v2418_v11  ;;  %v619_v18 = vpop.f32.mrb[31].mxu1 }
 0x19e   :  { %v711_v19 = vpack.c.bf16 %v619_v18, %v616_v12 }
 0x19f   :  { %1513 = vmatpush1.bf16.msra.mxu0 %v2681_v13  ;;  %2431 = vmatpush3.bf16.msra.mxu1 %v2697_v10 }
 0x1a0   :  { %1514 = vmatprep.subr.bf16.mxu0 %v2686_v15  ;;  %2432 = vmatprep.subr.bf16.mxu1 %v2699_v16  ;;  %v3287_v15 = vld [vmem:[%s3556_s7] sm:$0x7] }
 0x1a1   :  { %1114 = vmatmul.mubr.bf16.gmra.mrb[12].mxu0 %v3196_v27  ;;  %1221 = vmatmul.mubr.bf16.gmra.mrb[44].mxu1 %v3196_v27  ;;  %v3225_v27 = vld [vmem:[#allocation9 + $0x10] sm:$0xff]  }
 0x1a2   :  { %1123 = vmatprep.mubr.bf16.mxu0 %v707_v7  ;;  %1228 = vmatprep.mubr.bf16.mxu1 %v707_v7 }
 0x1a3   :  { %1515 = vmatpush1.bf16.msra.mxu0 %v2684_v20  ;;  %2433 = vmatpush3.bf16.msra.mxu1 %v2699_v16 }
 0x1a4   :  { %1516 = vmatprep.subr.bf16.mxu0 %v2689_v21  ;;  %2434 = vmatprep.subr.bf16.mxu1 %v2700_v22 }
 0x1a7   :  { %1517 = vmatpush1.bf16.msra.mxu0 %v2687_v23  ;;  %2435 = vmatpush3.bf16.msra.mxu1 %v2700_v22 }
 0x1a9   :  { %1124 = vmatmul.mubr.bf16.gmra.mrb[16].mxu0 %v3202_v35  ;;  %1229 = vmatmul.mubr.bf16.gmra.mrb[48].mxu1 %v3202_v35 }
 0x1aa   :  { %1133 = vmatprep.mubr.bf16.mxu0 %v709_v5  ;;  %1236 = vmatprep.mubr.bf16.mxu1 %v709_v5  ;;  %v780_v5 = vlaneseq }
 0x1ac   :  { %v3276_v8 = vshrl.u32 %v780_v5, 7 }
 0x1ae   :  { %v782_v13 = vsub.s32 0, %v3276_v8  ;;  %v790_v14 = vsub.s32 2, %v3276_v8  ;;  %v786_v16 = vsub.s32 1, %v3276_v8 }
 0x1b0   :  { %v1314_v21 = vrot.slane %v3287_v15, %v782_v13 }
 0x1b1   :  { %1134 = vmatmul.mubr.bf16.gmra.mrb[20].mxu0 %v3200_v33  ;;  %1237 = vmatmul.mubr.bf16.gmra.mrb[52].mxu1 %v3200_v33 }
 0x1b2   :  { %1143 = vmatprep.mubr.bf16.mxu0 %v711_v19  ;;  %1244 = vmatprep.mubr.bf16.mxu1 %v711_v19 }
 0x1b9   :  { %1144 = vmatmul.mubr.bf16.gmra.mrb[24].mxu0 %v3206_v41  ;;  %1245 = vmatmul.mubr.bf16.gmra.mrb[56].mxu1 %v3206_v41 }
 0x1ba   :  { %1153 = vmatprep.mubr.bf16.mxu0 %v713_v17  ;;  %1252 = vmatprep.mubr.bf16.mxu1 %v713_v17  ;;  %v778_v17 = vld [vmem:[%s3554_s5] sm:$0x7]  ;;  %s3052_s5 = smov [#allocation14]  }
 0x1bb   :  { %v783_v20 = vrot.slane %v778_v17, %v782_v13  ;;  %v3296_v22 = vrot.slane %v778_v17, %v790_v14  ;;  %s2085_s7 = sshll.u32 %s3052_s5, 4  ;;  %s2086_s7 = int_to_ptr.vmem [resolvable:$true] %s2085_s7 }
 0x1bc   :  { %s3007_s15 = scalar_lea.vmem %s2086_s7, 2048  ;;  %p3012_p7 = scmp.lt.s32.totalorder %s2086_s7, %s2086_s7 }
 0x1bd   :  { %p3008_p6 = scmp.ne.s32.totalorder %s2086_s7, %s3007_s15  ;;  %p3013_p8 = scmp.lt.s32.totalorder %s3007_s15, %s3007_s15 }
 0x1bf   :  { %p3014_p9 = por %p3013_p8, %p3012_p7 }
 0x1c1   :  { %1154 = vmatmul.mubr.bf16.gmra.mrb[28].mxu0 %v3204_v39  ;;  %1253 = vmatmul.mubr.bf16.gmra.mrb[60].mxu1 %v3204_v39  ;;  %p3015_p10 = pnand %p3014_p9, %p3008_p6 }
 0x1c2   :  { %1534 = vmatprep.mubr.bf16.mxu0 %v3051_v25  ;;  %2436 = vmatprep.mubr.bf16.mxu1 %v3218_v24 }
 0x1c9   :  { %1535 = vmatmul.mubr.bf16.vlgmr.msra.gmra.mrb[0].mxu0 %v3218_v24  ;;  %2437 = vmatmul.mubr.bf16.vlgmr.msra.gmra.mrb[64].mxu1 %v3223_v26 }
 0x1ca   :  { %1544 = vmatprep.mubr.bf16.mxu0 %v3051_v25  ;;  %2440 = vmatprep.mubr.bf16.mxu1 %v3225_v27 }
 0x1d1   :  { %1545 = vmatmul.mubr.bf16.gmra.mrb[4].mxu0 %v3223_v26  ;;  %2441 = vmatmul.mubr.bf16.gmra.mrb[68].mxu1 %v3230_v28 }
 0x1d2   :  { %1554 = vmatprep.mubr.bf16.mxu0 %v3051_v25  ;;  %2444 = vmatprep.mubr.bf16.mxu1 %v3232_v29 }
 0x1d9   :  { %1555 = vmatmul.mubr.bf16.gmra.mrb[8].mxu0 %v3225_v27  ;;  %2445 = vmatmul.mubr.bf16.gmra.mrb[72].mxu1 %v3237_v30 }
 0x1da   :  { %1564 = vmatprep.mubr.bf16.mxu0 %v3051_v25  ;;  %2448 = vmatprep.mubr.bf16.mxu1 %v3239_v31 }
 0x1e1   :  { %1565 = vmatmul.mubr.bf16.gmra.mrb[12].mxu0 %v3230_v28  ;;  %2449 = vmatmul.mubr.bf16.gmra.mrb[76].mxu1 %v3244_v32 }
 0x1e2   :  { %1574 = vmatprep.mubr.bf16.mxu0 %v3051_v25 }
 0x1e9   :  { %1575 = vmatmul.mubr.bf16.gmra.mrb[16].mxu0 %v3232_v29 }
 0x1ea   :  { %1584 = vmatprep.mubr.bf16.mxu0 %v3051_v25 }
 0x1f1   :  { %1585 = vmatmul.mubr.bf16.gmra.mrb[20].mxu0 %v3237_v30 }
 0x1f2   :  { %1594 = vmatprep.mubr.bf16.mxu0 %v3051_v25 }
 0x1f9   :  { %1595 = vmatmul.mubr.bf16.gmra.mrb[24].mxu0 %v3239_v31 }
 0x1fa   :  { %1604 = vmatprep.mubr.bf16.mxu0 %v3051_v25 }
 0x201   :  { %1605 = vmatmul.mubr.bf16.gmra.mrb[28].mxu0 %v3244_v32 }
 0x25c   :  { %v2292_v33 = vpop.f32.mrb[32].mxu1 }
 0x25d   :  { %v2293_v34 = vpop.f32.mrb[33].mxu1 }
 0x25e   :  { %v3252_v35 = vadd.f32 %v2293_v34, %v2292_v33  ;;  %v2295_v36 = vpop.f32.mrb[34].mxu1  ;;  %v787_v33 = vrot.slane %v778_v17, %v786_v16  ;;  %v1318_v34 = vrot.slane %v3287_v15, %v786_v16 }
 0x25f   :  { %v2296_v37 = vpop.f32.mrb[35].mxu1 }
 0x260   :  { %v3254_v38 = vadd.f32 %v2296_v37, %v2295_v36 }
 0x264   :  { %v2298_v39 = vpop.f32.mrb[36].mxu1 }
 0x265   :  { %v2299_v40 = vpop.f32.mrb[37].mxu1 }
 0x266   :  { %v3256_v41 = vadd.f32 %v2299_v40, %v2298_v39  ;;  %v2301_v42 = vpop.f32.mrb[38].mxu1  ;;  %v3302_v40 = vadd.f32 %v1314_v21, %v783_v20 }
 0x267   :  { %v2302_v43 = vpop.f32.mrb[39].mxu1 }
 0x268   :  { %v3258_v44 = vadd.f32 %v2302_v43, %v2301_v42  ;;  %v3307_v43 = vadd.f32 %v1318_v34, %v787_v33 }
 0x26c   :  { %v2304_v45 = vpop.f32.mrb[40].mxu1 }
 0x26d   :  { %v2305_v46 = vpop.f32.mrb[41].mxu1 }
 0x26e   :  { %v3260_v47 = vadd.f32 %v2305_v46, %v2304_v45  ;;  %v2307_v48 = vpop.f32.mrb[42].mxu1 }
 0x26f   :  { %v2308_v49 = vpop.f32.mrb[43].mxu1 }
 0x270   :  { %v3262_v50 = vadd.f32 %v2308_v49, %v2307_v48 }
 0x274   :  { %v2310_v51 = vpop.f32.mrb[44].mxu1 }
 0x275   :  { %v2311_v52 = vpop.f32.mrb[45].mxu1 }
 0x276   :  { %v3264_v53 = vadd.f32 %v2311_v52, %v2310_v51  ;;  %v2313_v54 = vpop.f32.mrb[46].mxu1 }
 0x277   :  { %v2314_v55 = vpop.f32.mrb[47].mxu1 }
 0x278   :  { %v3266_v56 = vadd.f32 %v2314_v55, %v2313_v54 }
 0x27c   :  { %v2316_v57 = vpop.f32.mrb[48].mxu1 }
 0x27d   :  { %v2317_v58 = vpop.f32.mrb[49].mxu1 }
 0x27e   :  { %v3268_v59 = vadd.f32 %v2317_v58, %v2316_v57  ;;  %v2319_v60 = vpop.f32.mrb[50].mxu1 }
 0x27f   :  { %v2320_v61 = vpop.f32.mrb[51].mxu1 }
 0x280   :  { %v3270_v62 = vadd.f32 %v2320_v61, %v2319_v60 }
 0x284   :  { %v2322_v63 = vpop.f32.mrb[52].mxu1 }
 0x285   :  { %v2323_v0 = vpop.f32.mrb[53].mxu1 }
 0x286   :  { %v3272_v1 = vadd.f32 %v2323_v0, %v2322_v63  ;;  %v2325_v2 = vpop.f32.mrb[54].mxu1 }
 0x287   :  { %v2326_v3 = vpop.f32.mrb[55].mxu1 }
 0x288   :  { %v3274_v4 = vadd.f32 %v2326_v3, %v2325_v2 }
 0x28c   :  { %v2328_v6 = vpop.f32.mrb[56].mxu1 }
 0x28d   :  { %v2329_v7 = vpop.f32.mrb[57].mxu1 }
 0x28e   :  { %v3278_v9 = vadd.f32 %v2329_v7, %v2328_v6  ;;  %v2331_v10 = vpop.f32.mrb[58].mxu1 }
 0x28f   :  { %v2332_v11 = vpop.f32.mrb[59].mxu1 }
 0x290   :  { %v3280_v12 = vadd.f32 %v2332_v11, %v2331_v10 }
 0x294   :  { %v2334_v18 = vpop.f32.mrb[60].mxu1 }
 0x295   :  { %v2335_v19 = vpop.f32.mrb[61].mxu1 }
 0x296   :  { %v2336_v23 = vadd.f32 %v2335_v19, %v2334_v18  ;;  %v2337_v25 = vpop.f32.mrb[62].mxu1 }
 0x297   :  { %v2338_v36 = vpop.f32.mrb[63].mxu1 }
 0x298   :  { %v3300_v37 = vadd.f32 %v2336_v23, %v3296_v22  ;;  %v2339_v39 = vadd.f32 %v2338_v36, %v2337_v25 }
 0x29a   :  { %v3305_v42 = vadd.f32 %v2339_v39, %v3296_v22 }
 0x29c   :  { %3558 = vst [vmem:[#allocation20_spill] sm:$0xff] %v3305_v42  ;;  %v1536_v45 = vpop.f32.mrb[0].mxu0  ;;  %v3309_v46 = vpop.f32.mrb[64].mxu1 }
 0x29d   :  { %v2453_v48 = vadd.f32 %v3302_v40, %v1536_v45  ;;  %v1538_v49 = vpop.f32.mrb[1].mxu0  ;;  %v3312_v51 = vpop.f32.mrb[65].mxu1 }
 0x29e   :  { %v2455_v52 = vadd.f32 %v3307_v43, %v1538_v49  ;;  %v1540_v54 = vpop.f32.mrb[2].mxu0  ;;  %v3315_v55 = vpop.f32.mrb[66].mxu1 }
 0x29f   :  { %v2212_v57 = vmul.f32 -1.442695, %v2453_v48  ;;  %v2457_v58 = vadd.f32 %v3302_v40, %v1540_v54  ;;  %v1542_v60 = vpop.f32.mrb[3].mxu0  ;;  %v3318_v61 = vpop.f32.mrb[67].mxu1 }
 0x2a0   :  { %v2228_v63 = vmul.f32 -1.442695, %v2455_v52  ;;  %v2459_v0 = vadd.f32 %v3307_v43, %v1542_v60 }
 0x2a1   :  { %2714 = vpow2.f32 %v2212_v57  ;;  %v2213_v2 = vmul.f32 -1.442695, %v2457_v58 }
 0x2a2   :  { %2716 = vpow2.f32 %v2228_v63  ;;  %v2229_v3 = vmul.f32 -1.442695, %v2459_v0 }
 0x2a3   :  { %2718 = vpow2.f32 %v2213_v2 }
 0x2a4   :  { %2720 = vpow2.f32 %v2229_v3  ;;  %v1546_v5 = vpop.f32.mrb[4].mxu0  ;;  %v3321_v6 = vpop.f32.mrb[68].mxu1 }
 0x2a5   :  { %v2461_v7 = vadd.f32 %v3302_v40, %v1546_v5  ;;  %v1548_v10 = vpop.f32.mrb[5].mxu0  ;;  %v3324_v11 = vpop.f32.mrb[69].mxu1 }
 0x2a6   :  { %v2463_v13 = vadd.f32 %v3307_v43, %v1548_v10  ;;  %v1550_v16 = vpop.f32.mrb[6].mxu0  ;;  %v3327_v17 = vpop.f32.mrb[70].mxu1 }
 0x2a7   :  { %v2214_v18 = vmul.f32 -1.442695, %v2461_v7  ;;  %v2465_v19 = vadd.f32 %v3302_v40, %v1550_v16  ;;  %v1552_v20 = vpop.f32.mrb[7].mxu0  ;;  %v3330_v21 = vpop.f32.mrb[71].mxu1 }
 0x2a8   :  { %v2230_v23 = vmul.f32 -1.442695, %v2463_v13  ;;  %v2467_v25 = vadd.f32 %v3307_v43, %v1552_v20 }
 0x2a9   :  { %2722 = vpow2.f32 %v2214_v18  ;;  %v2215_v33 = vmul.f32 -1.442695, %v2465_v19 }
 0x2aa   :  { %2724 = vpow2.f32 %v2230_v23  ;;  %v2231_v34 = vmul.f32 -1.442695, %v2467_v25  ;;  %v3348_v23 = vrot.slane %v3287_v15, %v790_v14 }
 0x2ab   :  { %v2715_v36 = vpop.eup %2714  ;;  %2726 = vpow2.f32 %v2215_v33 }
 0x2ac   :  { %v2717_v39 = vpop.eup %2716  ;;  %v1776_v45 = vadd.f32 1.0, %v2715_v36  ;;  %2728 = vpow2.f32 %v2231_v34  ;;  %v1556_v48 = vpop.f32.mrb[8].mxu0  ;;  %v2000_v36 = vunpack.c.l.bf16 %v3218_v24  ;;  %v1650_v14 = vadd.f32 %v3312_v51, %v3348_v23 }
 0x2ad   :  { %v3333_v49 = vpop.f32.mrb[72].mxu1  ;;  %v2719_v52 = vpop.eup %2718  ;;  %v1888_v54 = vadd.f32 1.0, %v2717_v39  ;;  %v2469_v57 = vadd.f32 %v3302_v40, %v1556_v48  ;;  %v1653_v51 = vadd.f32 %v3318_v61, %v3348_v23  ;;  %v1199_v61 = vadd.f32 %v3252_v35, %v3296_v22 }
 0x2ae   :  { %v1558_v58 = vpop.f32.mrb[9].mxu0  ;;  %v3336_v60 = vpop.f32.mrb[73].mxu1  ;;  %2730 = vrcp.f32 %v1776_v45  ;;  %v1777_v0 = vadd.f32 1.0, %v2719_v52 }
 0x2af   :  { %v2721_v63 = vpop.eup %2720  ;;  %v2471_v2 = vadd.f32 %v3307_v43, %v1558_v58  ;;  %v1560_v3 = vpop.f32.mrb[10].mxu0  ;;  %2732 = vrcp.f32 %v1888_v54  ;;  %v2216_v10 = vmul.f32 -1.442695, %v2469_v57 }
 0x2b0   :  { %v3339_v5 = vpop.f32.mrb[74].mxu1  ;;  %v1889_v7 = vadd.f32 1.0, %v2721_v63  ;;  %v2473_v13 = vadd.f32 %v3302_v40, %v1560_v3  ;;  %v1562_v16 = vpop.f32.mrb[11].mxu0  ;;  %2734 = vrcp.f32 %v1777_v0 }
 0x2b1   :  { %v3342_v18 = vpop.f32.mrb[75].mxu1  ;;  %v2232_v19 = vmul.f32 -1.442695, %v2471_v2  ;;  %v2475_v20 = vadd.f32 %v3307_v43, %v1562_v16 }
 0x2b2   :  { %2736 = vrcp.f32 %v1889_v7  ;;  %v2217_v25 = vmul.f32 -1.442695, %v2473_v13 }
 0x2b3   :  { %2738 = vpow2.f32 %v2216_v10  ;;  %v2233_v33 = vmul.f32 -1.442695, %v2475_v20  ;;  %v2723_v34 = vpop.eup %2722 }
 0x2b4   :  { %2740 = vpow2.f32 %v2232_v19  ;;  %v2725_v48 = vpop.eup %2724  ;;  %v1778_v54 = vadd.f32 1.0, %v2723_v34  ;;  %v1566_v8 = vpop.f32.mrb[12].mxu0 }
 0x2b5   :  { %2742 = vpow2.f32 %v2217_v25  ;;  %v2450_v15 = vpop.f32.mrb[76].mxu1  ;;  %v2727_v57 = vpop.eup %2726  ;;  %v1890_v58 = vadd.f32 1.0, %v2725_v48  ;;  %v2477_v63 = vadd.f32 %v3302_v40, %v1566_v8 }
 0x2b6   :  { %2744 = vpow2.f32 %v2233_v33  ;;  %v1568_v0 = vpop.f32.mrb[13].mxu0  ;;  %v3358_v2 = vadd.f32 %v2450_v15, %v3348_v23  ;;  %v3360_v3 = vpop.f32.mrb[77].mxu1  ;;  %v1779_v10 = vadd.f32 1.0, %v2727_v57 }
 0x2b7   :  { %v2729_v7 = vpop.eup %2728  ;;  %2746 = vrcp.f32 %v1778_v54  ;;  %v2479_v13 = vadd.f32 %v3307_v43, %v1568_v0  ;;  %v1570_v16 = vpop.f32.mrb[14].mxu0  ;;  %v2218_v25 = vmul.f32 -1.442695, %v2477_v63 }
 0x2b8   :  { %v2451_v19 = vpop.f32.mrb[78].mxu1  ;;  %2748 = vrcp.f32 %v1890_v58  ;;  %v1891_v20 = vadd.f32 1.0, %v2729_v7  ;;  %v2481_v33 = vadd.f32 %v3302_v40, %v1570_v16  ;;  %v1572_v34 = vpop.f32.mrb[15].mxu0 }
 0x2b9   :  { %v3366_v48 = vpop.f32.mrb[79].mxu1  ;;  %v2731_v8 = vpop.eup %2730  ;;  %2750 = vrcp.f32 %v1779_v10  ;;  %v2234_v15 = vmul.f32 -1.442695, %v2479_v13  ;;  %v2483_v54 = vadd.f32 %v3307_v43, %v1572_v34  ;;  %v3370_v57 = vadd.f32 %v2451_v19, %v3348_v23 }
 0x2ba   :  { %v3372_v0 = vpop.eup %2732  ;;  %2752 = vrcp.f32 %v1891_v20  ;;  %v2219_v58 = vmul.f32 -1.442695, %v2481_v33  ;;  %v1936_v63 = vmul.f32 %v2731_v8, %v1650_v14  ;;  %v1202_v19 = vadd.f32 %v3254_v38, %v3296_v22 }
 0x2bb   :  { %v2735_v7 = vpop.eup %2734  ;;  %v1984_v52 = vsub.f32 1.0, %v3372_v0  ;;  %2754 = vpow2.f32 %v2218_v25  ;;  %v2235_v10 = vmul.f32 -1.442695, %v2483_v54  ;;  %v1658_v20 = vadd.f32 %v3309_v46, %v3348_v23 }
 0x2bc   :  { %v3378_v13 = vpop.eup %2736  ;;  %2756 = vpow2.f32 %v2234_v15  ;;  %v1952_v34 = vadd.f32 %v1936_v63, %v1199_v61  ;;  %v1937_v45 = vmul.f32 %v2735_v7, %v1653_v51  ;;  %v1576_v33 = vpop.f32.mrb[16].mxu0  ;;  %v3559_v51 = vunpack.c.h.bf16 %v3218_v24 }
 0x2bd   :  { %v2739_v39 = vpop.eup %2738  ;;  %v3382_v35 = vmul.f32 %v2000_v36, %v1984_v52  ;;  %v1985_v14 = vsub.f32 1.0, %v3378_v13  ;;  %2758 = vpow2.f32 %v2219_v58  ;;  %v2485_v16 = vadd.f32 %v3302_v40, %v1576_v33  ;;  %v1578_v38 = vpop.f32.mrb[17].mxu0 }
 0x2be   :  { %v2741_v25 = vpop.eup %2740  ;;  %v1780_v8 = vadd.f32 1.0, %v2739_v39  ;;  %2760 = vtanh.f32 %v1952_v34  ;;  %v1953_v54 = vadd.f32 %v1937_v45, %v1202_v19  ;;  %v2487_v52 = vadd.f32 %v3307_v43, %v1578_v38  ;;  %v1580_v63 = vpop.f32.mrb[18].mxu0 }
 0x2bf   :  { %v2743_v15 = vpop.eup %2742  ;;  %v3390_v61 = vmul.f32 %v3559_v51, %v1985_v14  ;;  %v1892_v36 = vadd.f32 1.0, %v2741_v25  ;;  %2762 = vpow2.f32 %v2235_v10  ;;  %v1661_v45 = vadd.f32 %v3315_v55, %v3348_v23  ;;  %v1582_v7 = vpop.f32.mrb[19].mxu0 }
 0x2c0   :  { %v2745_v46 = vpop.eup %2744  ;;  %2764 = vrcp.f32 %v1780_v8  ;;  %v1781_v39 = vadd.f32 1.0, %v2743_v15  ;;  %v2220_v14 = vmul.f32 -1.442695, %v2485_v16  ;;  %v1207_v10 = vadd.f32 %v3256_v41, %v3296_v22 }
 0x2c1   :  { %v2747_v19 = vpop.eup %2746  ;;  %2766 = vrcp.f32 %v1892_v36  ;;  %v1893_v24 = vadd.f32 1.0, %v2745_v46  ;;  %v1210_v25 = vadd.f32 %v3258_v44, %v3296_v22  ;;  %v1215_v55 = vadd.f32 %v3260_v47, %v3296_v22 }
 0x2c2   :  { %v3397_v33 = vpop.eup %2748  ;;  %2768 = vrcp.f32 %v1781_v39  ;;  %v1938_v8 = vmul.f32 %v2747_v19, %v1658_v20  ;;  %v2236_v51 = vmul.f32 -1.442695, %v2487_v52  ;;  %v1666_v41 = vadd.f32 %v3324_v11, %v3348_v23 }
 0x2c3   :  { %v2751_v38 = vpop.eup %2750  ;;  %v1986_v15 = vsub.f32 1.0, %v3397_v33  ;;  %2770 = vrcp.f32 %v1893_v24  ;;  %v3560_v44 = vunpack.c.l.bf16 %v3223_v26  ;;  %v2489_v47 = vadd.f32 %v3302_v40, %v1580_v63 }
 0x2c4   :  { %v3406_v36 = vpop.eup %2752  ;;  %v1954_v16 = vadd.f32 %v1938_v8, %v1207_v10  ;;  %v1939_v46 = vmul.f32 %v2751_v38, %v1661_v45  ;;  %2772 = vtanh.f32 %v1953_v54  ;;  %v1586_v19 = vpop.f32.mrb[20].mxu0  ;;  %v2491_v54 = vadd.f32 %v3307_v43, %v1582_v7 }
 0x2c5   :  { %v2755_v34 = vpop.eup %2754  ;;  %v3412_v20 = vmul.f32 %v3560_v44, %v1986_v15  ;;  %v1987_v39 = vsub.f32 1.0, %v3406_v36  ;;  %2774 = vpow2.f32 %v2220_v14  ;;  %v1588_v45 = vpop.f32.mrb[21].mxu0  ;;  %v3561_v11 = vunpack.c.h.bf16 %v3223_v26 }
 0x2c6   :  { %v2757_v52 = vpop.eup %2756  ;;  %v1782_v24 = vadd.f32 1.0, %v2755_v34  ;;  %2776 = vtanh.f32 %v1954_v16  ;;  %v1955_v10 = vadd.f32 %v1939_v46, %v1210_v25  ;;  %v2493_v44 = vadd.f32 %v3302_v40, %v1586_v19  ;;  %v1590_v14 = vpop.f32.mrb[22].mxu0 }
 0x2c7   :  { %v2759_v8 = vpop.eup %2758  ;;  %v3419_v38 = vmul.f32 %v3561_v11, %v1987_v39  ;;  %v1894_v15 = vadd.f32 1.0, %v2757_v52  ;;  %2778 = vpow2.f32 %v2236_v51  ;;  %v2495_v34 = vadd.f32 %v3307_v43, %v1588_v45  ;;  %v1592_v16 = vpop.f32.mrb[23].mxu0 }
 0x2c8   :  { %v2761_v58 = vpop.eup %2760  ;;  %2780 = vrcp.f32 %v1782_v24  ;;  %v1783_v63 = vadd.f32 1.0, %v2759_v8  ;;  %v1669_v7 = vadd.f32 %v3330_v21, %v3348_v23  ;;  %v2221_v46 = vmul.f32 -1.442695, %v2489_v47 }
 0x2c9   :  { %v2763_v25 = vpop.eup %2762  ;;  %2782 = vrcp.f32 %v1894_v15  ;;  %v2032_v26 = vmul.f32 %v2761_v58, %v3372_v0  ;;  %v2497_v39 = vadd.f32 %v3302_v40, %v1590_v14  ;;  %v1218_v19 = vadd.f32 %v3262_v50, %v3296_v22 }
 0x2ca   :  { %v2765_v51 = vpop.eup %2764  ;;  %2784 = vrcp.f32 %v1783_v63  ;;  %v1895_v52 = vadd.f32 1.0, %v2763_v25  ;;  %v2237_v24 = vmul.f32 -1.442695, %v2491_v54  ;;  %v2222_v21 = vmul.f32 -1.442695, %v2493_v44 }
 0x2cb   :  { %v3429_v8 = vpop.eup %2766  ;;  %v2048_v45 = vadd.f32 %v2032_v26, %v3382_v35  ;;  %2786 = vtanh.f32 %v1955_v10  ;;  %v1940_v11 = vmul.f32 %v2765_v51, %v1666_v41  ;;  %v2238_v58 = vmul.f32 -1.442695, %v2495_v34 }
 0x2cc   :  { %v2769_v15 = vpop.eup %2768  ;;  %v1988_v0 = vsub.f32 1.0, %v3429_v8  ;;  %2788 = vrcp.f32 %v1895_v52  ;;  %v2499_v47 = vadd.f32 %v3307_v43, %v1592_v16  ;;  %v2223_v50 = vmul.f32 -1.442695, %v2497_v39  ;;  %v1596_v25 = vpop.f32.mrb[24].mxu0 }
 0x2cd   :  { %v3434_v14 = vpop.eup %2770  ;;  %2064 = vst [vmem:[#allocation14] sm:$0xff] %v2048_v45  ;;  %2790 = vpow2.f32 %v2221_v46  ;;  %v1956_v54 = vadd.f32 %v1940_v11, %v1215_v55  ;;  %v1941_v63 = vmul.f32 %v2769_v15, %v1669_v7  ;;  %v3562_v35 = vunpack.c.l.bf16 %v3225_v27  ;;  %v1598_v34 = vpop.f32.mrb[25].mxu0 }
 0x2ce   :  { %v2773_v42 = vpop.eup %2772  ;;  %v1989_v41 = vsub.f32 1.0, %v3434_v14  ;;  %2792 = vpow2.f32 %v2237_v24  ;;  %v1674_v44 = vadd.f32 %v3321_v6, %v3348_v23  ;;  %v1677_v55 = vadd.f32 %v3327_v17, %v3348_v23  ;;  %v1600_v46 = vpop.f32.mrb[26].mxu0 }
 0x2cf   :  { %v3438_v10 = vmul.f32 %v3562_v35, %v1988_v0  ;;  %v2775_v16 = vpop.eup %2774  ;;  %v2033_v26 = vmul.f32 %v2773_v42, %v3378_v13  ;;  %2794 = vpow2.f32 %v2222_v21  ;;  %v1957_v7 = vadd.f32 %v1941_v63, %v1218_v19  ;;  %v1602_v6 = vpop.f32.mrb[27].mxu0 }
 0x2d0   :  { %v2777_v39 = vpop.eup %2776  ;;  %v3563_v51 = vunpack.c.h.bf16 %v3225_v27  ;;  %v1784_v45 = vadd.f32 1.0, %v2775_v16  ;;  %2796 = vpow2.f32 %v2238_v58  ;;  %v2501_v24 = vadd.f32 %v3302_v40, %v1596_v25 }
 0x2d1   :  { %v2779_v11 = vpop.eup %2778  ;;  %v2034_v15 = vmul.f32 %v2777_v39, %v3397_v33  ;;  %v2049_v42 = vadd.f32 %v2033_v26, %v3390_v61  ;;  %2798 = vpow2.f32 %v2223_v50  ;;  %v2239_v13 = vmul.f32 -1.442695, %v2499_v47 }
 0x2d2   :  { %v3448_v52 = vmul.f32 %v3563_v51, %v1989_v41  ;;  %v2781_v17 = vpop.eup %2780  ;;  %v2007_v19 = vunpack.c.h.bf16 %v3230_v28  ;;  %v1223_v27 = vadd.f32 %v3264_v53, %v3296_v22  ;;  %2800 = vrcp.f32 %v1784_v45 }
 0x2d3   :  { %v1896_v21 = vadd.f32 1.0, %v2779_v11  ;;  %v3456_v0 = vpop.eup %2782  ;;  %v1226_v58 = vadd.f32 %v3266_v56, %v3296_v22  ;;  %v2050_v63 = vadd.f32 %v2034_v15, %v3412_v20  ;;  %2065 = vst [vmem:[#allocation14 + $0x8] sm:$0xff] %v2049_v42  ;;  %v1942_v33 = vmul.f32 %v2781_v17, %v1674_v44 }
 0x2d4   :  { %2802 = vtanh.f32 %v1956_v54  ;;  %v2785_v61 = vpop.eup %2784  ;;  %v1990_v47 = vsub.f32 1.0, %v3456_v0  ;;  %v2224_v50 = vmul.f32 -1.442695, %v2501_v24  ;;  %v1682_v53 = vadd.f32 %v3336_v60, %v3348_v23  ;;  %v1606_v16 = vpop.f32.mrb[28].mxu0 }
 0x2d5   :  { %2804 = vrcp.f32 %v1896_v21  ;;  %v2787_v25 = vpop.eup %2786  ;;  %2066 = vst [vmem:[#allocation14 + $0x10] sm:$0xff] %v2050_v63  ;;  %v1958_v35 = vadd.f32 %v1942_v33, %v1223_v27  ;;  %v1943_v41 = vmul.f32 %v2785_v61, %v1677_v55  ;;  %v2503_v56 = vadd.f32 %v3307_v43, %v1598_v34  ;;  %v1608_v60 = vpop.f32.mrb[29].mxu0 }
 0x2d6   :  { %2806 = vpow2.f32 %v2239_v13  ;;  %v3465_v20 = vpop.eup %2788  ;;  %v3564_v54 = vunpack.c.l.bf16 %v3230_v28  ;;  %v2035_v26 = vmul.f32 %v2787_v25, %v3406_v36  ;;  %v2509_v39 = vadd.f32 %v3302_v40, %v1606_v16  ;;  %v1610_v24 = vpop.f32.mrb[30].mxu0 }
 0x2d7   :  { %2808 = vtanh.f32 %v1957_v7  ;;  %v2791_v51 = vpop.eup %2790  ;;  %v1991_v45 = vsub.f32 1.0, %v3465_v20  ;;  %v1959_v55 = vadd.f32 %v1943_v41, %v1226_v58  ;;  %v2511_v34 = vadd.f32 %v3307_v43, %v1608_v60  ;;  %v1612_v36 = vpop.f32.mrb[31].mxu0 }
 0x2d8   :  { %v3469_v44 = vmul.f32 %v3564_v54, %v1990_v47  ;;  %2810 = vtanh.f32 %v1958_v35  ;;  %v2793_v11 = vpop.eup %2792  ;;  %v2051_v15 = vadd.f32 %v2035_v26, %v3419_v38  ;;  %v1785_v28 = vadd.f32 1.0, %v2791_v51 }
 0x2d9   :  { %2812 = vpow2.f32 %v2224_v50  ;;  %v2505_v42 = vadd.f32 %v3302_v40, %v1600_v46  ;;  %v2795_v7 = vpop.eup %2794  ;;  %v3477_v13 = vmul.f32 %v2007_v19, %v1991_v45  ;;  %v1897_v17 = vadd.f32 1.0, %v2793_v11 }
 0x2da   :  { %2814 = vtanh.f32 %v1959_v55  ;;  %v2507_v27 = vadd.f32 %v3307_v43, %v1602_v6  ;;  %v2797_v21 = vpop.eup %2796  ;;  %2067 = vst [vmem:[#allocation14 + $0x18] sm:$0xff] %v2051_v15  ;;  %v1786_v58 = vadd.f32 1.0, %v2795_v7  ;;  %v2513_v63 = vadd.f32 %v3302_v40, %v1610_v24 }
 0x2db   :  { %2816 = vrcp.f32 %v1785_v28  ;;  %v2515_v38 = vadd.f32 %v3307_v43, %v1612_v36  ;;  %v2799_v33 = vpop.eup %2798  ;;  %v1898_v61 = vadd.f32 1.0, %v2797_v21  ;;  %v2240_v46 = vmul.f32 -1.442695, %v2503_v56 }
 0x2dc   :  { %2818 = vrcp.f32 %v1897_v17  ;;  %v2801_v47 = vpop.eup %2800  ;;  %v2008_v19 = vunpack.c.l.bf16 %v3232_v29  ;;  %v1787_v50 = vadd.f32 1.0, %v2799_v33  ;;  %v2225_v25 = vmul.f32 -1.442695, %v2505_v42 }
 0x2dd   :  { %2820 = vrcp.f32 %v1786_v58  ;;  %v1231_v6 = vadd.f32 %v3268_v59, %v3296_v22  ;;  %v2241_v41 = vmul.f32 -1.442695, %v2507_v27  ;;  %v1944_v16 = vmul.f32 %v2801_v47, %v1682_v53 }
 0x2de   :  { %v2803_v35 = vpop.eup %2802  ;;  %2822 = vrcp.f32 %v1898_v61  ;;  %v2226_v26 = vmul.f32 -1.442695, %v2509_v39  ;;  %v2242_v59 = vmul.f32 -1.442695, %v2511_v34  ;;  %v2009_v28 = vunpack.c.h.bf16 %v3232_v29 }
 0x2df   :  { %v3485_v40 = vpop.eup %2804  ;;  %2824 = vrcp.f32 %v1787_v50  ;;  %v2036_v43 = vmul.f32 %v2803_v35, %v3429_v8  ;;  %v1960_v60 = vadd.f32 %v1944_v16, %v1231_v6  ;;  %v1685_v8 = vadd.f32 %v3342_v18, %v3348_v23 }
 0x2e0   :  { %v2807_v54 = vpop.eup %2806  ;;  %v1992_v56 = vsub.f32 1.0, %v3485_v40  ;;  %2826 = vpow2.f32 %v2240_v46  ;;  %v2243_v29 = vmul.f32 -1.442695, %v2515_v38  ;;  %v1239_v38 = vadd.f32 %v3272_v1, %v3296_v22 }
 0x2e1   :  { %v2809_v51 = vpop.eup %2808  ;;  %v2052_v45 = vadd.f32 %v2036_v43, %v3438_v10  ;;  %v1899_v55 = vadd.f32 1.0, %v2807_v54  ;;  %2828 = vpow2.f32 %v2225_v25  ;;  %v2227_v10 = vmul.f32 -1.442695, %v2513_v63 }
 0x2e2   :  { %v2811_v24 = vpop.eup %2810  ;;  %v3490_v11 = vmul.f32 %v2008_v19, %v1992_v56  ;;  %v2037_v53 = vmul.f32 %v2809_v51, %v3434_v14  ;;  %2830 = vpow2.f32 %v2241_v41  ;;  %v1690_v14 = vadd.f32 %v3333_v49, %v3348_v23 }
 0x2e3   :  { %v2813_v15 = vpop.eup %2812  ;;  %v2038_v39 = vmul.f32 %v2811_v24, %v3456_v0  ;;  %2068 = vst [vmem:[#allocation14 + $0x20] sm:$0xff] %v2052_v45  ;;  %2832 = vrcp.f32 %v1899_v55  ;;  %v1234_v0 = vadd.f32 %v3270_v62, %v3296_v22  ;;  %v2010_v49 = vunpack.c.l.bf16 %v3237_v30 }
 0x2e4   :  { %v2815_v42 = vpop.eup %2814  ;;  %v2053_v34 = vadd.f32 %v2037_v53, %v3448_v52  ;;  %v1788_v36 = vadd.f32 1.0, %v2813_v15  ;;  %2834 = vpow2.f32 %v2226_v26  ;;  %v1693_v52 = vadd.f32 %v3339_v5, %v3348_v23 }
 0x2e5   :  { %v2817_v7 = vpop.eup %2816  ;;  %v2054_v17 = vadd.f32 %v2038_v39, %v3469_v44  ;;  %v2039_v18 = vmul.f32 %v2815_v42, %v3465_v20  ;;  %2836 = vpow2.f32 %v2242_v59  ;;  %v1242_v19 = vadd.f32 %v3274_v4, %v3296_v22 }
 0x2e6   :  { %v3502_v27 = vpop.eup %2818  ;;  %2069 = vst [vmem:[#allocation14 + $0x28] sm:$0xff] %v2053_v34  ;;  %2838 = vrcp.f32 %v1788_v36  ;;  %v1945_v21 = vmul.f32 %v2817_v7, %v1685_v8  ;;  %v2011_v1 = vunpack.c.h.bf16 %v3237_v30  ;;  %v1698_v26 = vadd.f32 %v3360_v3, %v3348_v23 }
 0x2e7   :  { %v2821_v58 = vpop.eup %2820  ;;  %v1993_v44 = vsub.f32 1.0, %v3502_v27  ;;  %2070 = vst [vmem:[#allocation14 + $0x30] sm:$0xff] %v2054_v17  ;;  %v2055_v20 = vadd.f32 %v2039_v18, %v3477_v13  ;;  %2840 = vpow2.f32 %v2227_v10  ;;  %v1247_v53 = vadd.f32 %v3278_v9, %v3296_v22 }
 0x2e8   :  { %v2823_v63 = vpop.eup %2822  ;;  %v1946_v62 = vmul.f32 %v2821_v58, %v1690_v14  ;;  %2842 = vtanh.f32 %v1960_v60  ;;  %v1961_v33 = vadd.f32 %v1945_v21, %v1234_v0  ;;  %v1701_v9 = vadd.f32 %v3366_v48, %v3348_v23 }
 0x2e9   :  { %v2825_v61 = vpop.eup %2824  ;;  %v2025_v46 = vmul.f32 %v2009_v28, %v1993_v44  ;;  %v1994_v5 = vsub.f32 1.0, %v2823_v63  ;;  %2071 = vst [vmem:[#allocation14 + $0x38] sm:$0xff] %v2055_v20  ;;  %2844 = vpow2.f32 %v2243_v29  ;;  %v2012_v17 = vunpack.c.l.bf16 %v3239_v31 }
 0x2ea   :  { %v2827_v47 = vpop.eup %2826  ;;  %v1962_v50 = vadd.f32 %v1946_v62, %v1239_v38  ;;  %v1947_v25 = vmul.f32 %v2825_v61, %v1693_v52  ;;  %2846 = vtanh.f32 %v1961_v33  ;;  %v2013_v52 = vunpack.c.h.bf16 %v3239_v31 }
 0x2eb   :  { %v2829_v13 = vpop.eup %2828  ;;  %v2026_v35 = vmul.f32 %v2010_v49, %v1994_v5  ;;  %v1900_v6 = vadd.f32 1.0, %v2827_v47  ;;  %v2014_v38 = vunpack.c.l.bf16 %v3244_v32 }
 0x2ec   :  { %v2831_v41 = vpop.eup %2830  ;;  %v1789_v16 = vadd.f32 1.0, %v2829_v13  ;;  %2848 = vtanh.f32 %v1962_v50  ;;  %v1963_v43 = vadd.f32 %v1947_v25, %v1242_v19  ;;  %v2874_v19 = vld [vmem:[#allocation9 + $0x38] sm:$0xff]  }
 0x2ed   :  { %v2833_v54 = vpop.eup %2832  ;;  %2850 = vrcp.f32 %v1900_v6  ;;  %v1901_v56 = vadd.f32 1.0, %v2831_v41  ;;  %v2015_v50 = vunpack.c.h.bf16 %v2874_v19  ;;  %v3565_v41 = vld [vmem:[#allocation20_spill] sm:$0xff] }
 0x2ee   :  { %v2835_v60 = vpop.eup %2834  ;;  %v1995_v4 = vsub.f32 1.0, %v2833_v54  ;;  %2852 = vrcp.f32 %v1789_v16 }
 0x2ef   :  { %v2837_v51 = vpop.eup %2836  ;;  %2854 = vrcp.f32 %v1901_v56  ;;  %v1790_v45 = vadd.f32 1.0, %v2835_v60 }
 0x2f0   :  { %v2839_v55 = vpop.eup %2838  ;;  %v2027_v59 = vmul.f32 %v2011_v1, %v1995_v4  ;;  %v1902_v24 = vadd.f32 1.0, %v2837_v51  ;;  %2856 = vtanh.f32 %v1963_v43 }
 0x2f1   :  { %v2841_v30 = vpop.eup %2840  ;;  %2858 = vrcp.f32 %v1790_v45  ;;  %v1948_v8 = vmul.f32 %v2839_v55, %v1698_v26 }
 0x2f2   :  { %v2843_v15 = vpop.eup %2842  ;;  %2860 = vrcp.f32 %v1902_v24  ;;  %v1791_v28 = vadd.f32 1.0, %v2841_v30 }
 0x2f3   :  { %v2845_v3 = vpop.eup %2844  ;;  %v2040_v39 = vmul.f32 %v2843_v15, %v3485_v40  ;;  %v1964_v10 = vadd.f32 %v1948_v8, %v1247_v53 }
 0x2f4   :  { %v2847_v42 = vpop.eup %2846  ;;  %2862 = vrcp.f32 %v1791_v28  ;;  %v1903_v34 = vadd.f32 1.0, %v2845_v3 }
 0x2f5   :  { %v2056_v36 = vadd.f32 %v2040_v39, %v3490_v11  ;;  %v2041_v14 = vmul.f32 %v2847_v42, %v3502_v27  ;;  %2864 = vtanh.f32 %v1964_v10  ;;  %v1250_v11 = vadd.f32 %v3280_v12, %v3296_v22 }
 0x2f6   :  { %v2849_v7 = vpop.eup %2848  ;;  %2866 = vrcp.f32 %v1903_v34 }
 0x2f7   :  { %v2851_v18 = vpop.eup %2850  ;;  %v2042_v29 = vmul.f32 %v2849_v7, %v2823_v63  ;;  %2072 = vst [vmem:[#allocation14 + $0x40] sm:$0xff] %v2056_v36  ;;  %v2057_v40 = vadd.f32 %v2041_v14, %v2025_v46 }
 0x2f8   :  { %v2853_v0 = vpop.eup %2852  ;;  %v1996_v21 = vsub.f32 1.0, %v2851_v18 }
 0x2f9   :  { %v2855_v58 = vpop.eup %2854  ;;  %v2058_v27 = vadd.f32 %v2042_v29, %v2026_v35  ;;  %2073 = vst [vmem:[#allocation14 + $0x48] sm:$0xff] %v2057_v40  ;;  %v1949_v49 = vmul.f32 %v2853_v0, %v1701_v9 }
 0x2fa   :  { %v2857_v23 = vpop.eup %2856  ;;  %v2028_v48 = vmul.f32 %v2012_v17, %v1996_v21  ;;  %v1997_v44 = vsub.f32 1.0, %v2855_v58 }
 0x2fb   :  { %v2859_v20 = vpop.eup %2858  ;;  %2074 = vst [vmem:[#allocation14 + $0x50] sm:$0xff] %v2058_v27  ;;  %v2043_v63 = vmul.f32 %v2857_v23, %v2833_v54  ;;  %v1965_v62 = vadd.f32 %v1949_v49, %v1250_v11 }
 0x2fc   :  { %v2861_v33 = vpop.eup %2860  ;;  %v2029_v61 = vmul.f32 %v2013_v52, %v1997_v44  ;;  %v1950_v31 = vmul.f32 %v2859_v20, %v3358_v2 }
 0x2fd   :  { %v1998_v46 = vsub.f32 1.0, %v2861_v33  ;;  %v2059_v5 = vadd.f32 %v2043_v63, %v2027_v59  ;;  %2868 = vtanh.f32 %v1965_v62 }
 0x2fe   :  { %v2863_v12 = vpop.eup %2862  ;;  %v1966_v22 = vadd.f32 %v1950_v31, %v3300_v37 }
 0x2ff   :  { %v2865_v47 = vpop.eup %2864  ;;  %v2030_v25 = vmul.f32 %v2014_v38, %v1998_v46  ;;  %2075 = vst [vmem:[#allocation14 + $0x58] sm:$0xff] %v2059_v5  ;;  %v1951_v32 = vmul.f32 %v2863_v12, %v3370_v57 }
 0x300   :  { %v2867_v13 = vpop.eup %2866  ;;  %2870 = vtanh.f32 %v1966_v22  ;;  %v2044_v35 = vmul.f32 %v2865_v47, %v2851_v18 }
 0x301   :  { %v1999_v6 = vsub.f32 1.0, %v2867_v13  ;;  %v1967_v1 = vadd.f32 %v1951_v32, %v3565_v41 }
 0x302   :  { %v2060_v2 = vadd.f32 %v2044_v35, %v2028_v48 }
 0x303   :  { %v2031_v16 = vmul.f32 %v2015_v50, %v1999_v6  ;;  %2872 = vtanh.f32 %v1967_v1 }
 0x304   :  { %2076 = vst [vmem:[#allocation14 + $0x60] sm:$0xff] %v2060_v2 }
 0x307   :  { %v2869_v43 = vpop.eup %2868 }
 0x308   :  { %v2045_v54 = vmul.f32 %v2869_v43, %v2855_v58 }
 0x30a   :  { %v2871_v37 = vpop.eup %2870  ;;  %v2061_v56 = vadd.f32 %v2045_v54, %v2029_v61 }
 0x30b   :  { %v2046_v26 = vmul.f32 %v2871_v37, %v2861_v33 }
 0x30c   :  { %2077 = vst [vmem:[#allocation14 + $0x68] sm:$0xff] %v2061_v56 }
 0x30d   :  { %v2873_v60 = vpop.eup %2872  ;;  %v2062_v4 = vadd.f32 %v2046_v26, %v2030_v25 }
 0x30e   :  { %v2047_v57 = vmul.f32 %v2873_v60, %v2867_v13 }
 0x30f   :  { %2078 = vst [vmem:[#allocation14 + $0x70] sm:$0xff] %v2062_v4 }
 0x310   :  { %v2063_v51 = vadd.f32 %v2047_v57, %v2031_v16 }
 0x312   :  { %2079 = vst [vmem:[#allocation14 + $0x78] sm:$0xff] %v2063_v51 }
 0x313   :  { %3018 = shalt.err (!%p3015_p10)
}
 0x314   :  { %s3019_s20 = scalar_lea.hbm %s3557_s8, 2048 }
 0x315   :  { %p3020_p11 = scmp.ne.s32.totalorder %s3557_s8, %s3019_s20  ;;  %p3023_p12 = scmp.lt.u32.totalorder %s3019_s20, %s3557_s8 }
 0x317   :  { %p3025_p13 = pnand %p3023_p12, %p3020_p11 }
 0x319   :  { %3028 = shalt.err (!%p3025_p13)
}
 0x31a   :  { %2091 = dma.vmem_to_hbm [thread:$0]  %s2086_s7, 2048, %s3557_s8, [#allocation5], %s3045_s0, %s3045_s0, %s3046_s17  }
 0x31b   :  { %3037 = dma.done.wait [#allocation5], 2048  }
 0x31c   :  { %3038 = vsyncadd [#allocation5], 4294965248 }
 0x31d   :  { %2095 = vsyncpa [#allocation4], 1 }
 0x31e   :  { %2096 = vsyncpa [#allocation7], 1 }
 0x31f   :  { %2097 = vsyncpa [#allocation10], 1 }
 0x320   :  { %2098 = vsyncpa [#allocation13], 1 }
 0x321   :  { %2099 = vsyncpa [#allocation5], 1 }

</bundles_post_ra>
